<compile_context>
chip_gen: v6e
topology: v6e:2x2x1
jax: 0.10.0
libtpu: 0.0.40
codegen_flags: <defaults>
</compile_context>

<pallas_src>
import math

import jax
import jax.numpy as jnp
from jax import lax
from jax.experimental import pallas as pl
from jax.experimental.pallas import tpu as pltpu

LANE = 128  # TPU lane width; all kernel output last-dims are padded to this.


def _round_up(n, m):
    return ((n + m - 1) // m) * m


# ---------------------------------------------------------------------------
# Pallas kernels
# ---------------------------------------------------------------------------
def conv_pool_kernel(p0_ref, p1_ref, p2_ref, p3_ref, w_ref, b_ref, o_ref):
    """Fused conv(im2col matmul) + 2x2 max-pool + bias + ReLU for one row tile.

    p{0..3}: (TN, K) patch tiles, one per pooling-window phase.
    w:       (K, 128) conv weight, output channels zero-padded to 128 lanes.
    b:       (1, 128) bias (zero-padded).
    o:       (TN, 128) pooled activations (lane-dense store).
    """
    tn = o_ref.shape[0]
    # One MXU weight push / result drain for all four pooling phases.
    pcat = jnp.concatenate(
        [p0_ref[...], p1_ref[...], p2_ref[...], p3_ref[...]], axis=0
    )  # (4*TN, K); TN is a multiple of 8 so slices below are sublane-aligned.
    y = jnp.dot(pcat, w_ref[...], preferred_element_type=jnp.float32)  # (4*TN, 128)

    # max over the 4 pooling phases (bias/ReLU commute with the max, so apply
    # them once afterwards at tile width).
    m01 = jnp.maximum(y[0:tn], y[tn:2 * tn])
    m23 = jnp.maximum(y[2 * tn:3 * tn], y[3 * tn:4 * tn])
    m = jnp.maximum(m01, m23)
    o_ref[...] = jnp.maximum(m + b_ref[...], 0.0).astype(o_ref.dtype)


def mlp_kernel(x_ref, w1_ref, b1_ref, w2_ref, b2_ref, w3_ref, b3_ref, o_ref):
    """Fused fc1 -> ReLU -> fc2 -> ReLU -> fc3 (all widths padded to 128)."""
    h = jnp.dot(x_ref[...], w1_ref[...], preferred_element_type=jnp.float32) + b1_ref[...]
    h = jnp.maximum(h, 0.0)
    h = jnp.dot(h, w2_ref[...], preferred_element_type=jnp.float32) + b2_ref[...]
    h = jnp.maximum(h, 0.0)
    o = jnp.dot(h, w3_ref[...], preferred_element_type=jnp.float32) + b3_ref[...]
    o_ref[...] = o.astype(o_ref.dtype)


# ---------------------------------------------------------------------------
# pallas_call wrappers (row-tiled grids, weight-stationary BlockSpecs)
# ---------------------------------------------------------------------------
def conv_pool_call(patches, w_pad, b_pad, tn):
    n_pad, kdim = patches[0].shape
    grid = n_pad // tn

    flops = 2 * 4 * n_pad * kdim * LANE
    bytes_accessed = 4 * (4 * n_pad * kdim + kdim * LANE + LANE + n_pad * LANE)

    patch_spec = pl.BlockSpec((tn, kdim), lambda i: (i, 0))
    return pl.pallas_call(
        conv_pool_kernel,
        out_shape=jax.ShapeDtypeStruct((n_pad, LANE), jnp.float32),
        grid=(grid,),
        in_specs=[patch_spec] * 4
        + [
            pl.BlockSpec(w_pad.shape, lambda i: (0, 0)),
            pl.BlockSpec(b_pad.shape, lambda i: (0, 0)),
        ],
        out_specs=pl.BlockSpec((tn, LANE), lambda i: (i, 0)),
        compiler_params=pltpu.CompilerParams(dimension_semantics=("parallel",)),
        cost_estimate=pl.CostEstimate(
            flops=flops, transcendentals=0, bytes_accessed=bytes_accessed
        ),
    )(*patches, w_pad, b_pad)


def mlp_call(x_pad, w1, b1, w2, b2, w3, b3, tb):
    b_pad, kdim = x_pad.shape
    grid = b_pad // tb
    consts = (w1, b1, w2, b2, w3, b3)

    flops = 2 * b_pad * (kdim * LANE + LANE * LANE + LANE * LANE)
    bytes_accessed = 4 * (b_pad * kdim + sum(int(c.size) for c in consts) + b_pad * LANE)

    return pl.pallas_call(
        mlp_kernel,
        out_shape=jax.ShapeDtypeStruct((b_pad, LANE), jnp.float32),
        grid=(grid,),
        in_specs=[pl.BlockSpec((tb, kdim), lambda i: (i, 0))]
        + [pl.BlockSpec(c.shape, lambda i: (0, 0)) for c in consts],
        out_specs=pl.BlockSpec((tb, LANE), lambda i: (i, 0)),
        compiler_params=pltpu.CompilerParams(dimension_semantics=("parallel",)),
        cost_estimate=pl.CostEstimate(
            flops=flops, transcendentals=0, bytes_accessed=bytes_accessed
        ),
    )(x_pad, *consts)


# ---------------------------------------------------------------------------
# Host-side glue: NHWC im2col with pooling-phase selection
# ---------------------------------------------------------------------------
def _im2col_pooled_nhwc(x, k, pool_pos, out_hw):
    """x: (B, H, W, C) NHWC.  Returns (B*out_hw*out_hw, k*k*C) patch matrix.

    Rows are ordered (b, i, j) over pooled-output positions; columns are ordered
    (kh, kw, c).  pool_pos = (ph, pw) selects one of the four 2x2 pooling-window
    positions: conv-output pixel is (2*i + ph + kh, 2*j + pw + kw)."""
    ph, pw = pool_pos
    bsz, _, _, c = x.shape
    cols = []
    for kh in range(k):
        for kw in range(k):
            hs = ph + kh
            ws = pw + kw
            s = x[:, hs:hs + 2 * out_hw - 1:2, ws:ws + 2 * out_hw - 1:2, :]  # (B,oh,ow,C)
            cols.append(s)
    cols = jnp.stack(cols, axis=3)  # (B, oh, ow, k*k, C)
    return cols.reshape(bsz * out_hw * out_hw, k * k * c)


def conv_block(x_nhwc, w_oihw, b, out_hw, tn_cap=256):
    """Fused conv(kxk, VALID) + bias + ReLU + 2x2/2 maxpool.  NHWC in / NHWC out."""
    bsz, _, _, cin = x_nhwc.shape
    cout, _, kh, kw = w_oihw.shape
    kdim = kh * kw * cin

    # Weight: (Cout, Cin, KH, KW) -> (KH, KW, Cin, Cout) -> (K, Cout) -> pad to 128 lanes.
    w_mat = jnp.transpose(w_oihw, (2, 3, 1, 0)).reshape(kdim, cout)
    w_pad = jnp.pad(w_mat, ((0, 0), (0, LANE - cout)))
    b_pad = jnp.pad(b.reshape(1, cout), ((0, 0), (0, LANE - cout)))

    n = bsz * out_hw * out_hw
    tn = min(tn_cap, _round_up(n, 8))
    n_pad = _round_up(n, tn)

    patches = []
    for ph in (0, 1):
        for pw in (0, 1):
            p = _im2col_pooled_nhwc(x_nhwc, kh, (ph, pw), out_hw)  # (n, kdim)
            patches.append(jnp.pad(p, ((0, n_pad - n), (0, 0))))

    out = conv_pool_call(patches, w_pad, b_pad, tn)  # (n_pad, 128)
    return out[:n, :cout].reshape(bsz, out_hw, out_hw, cout)


# ---------------------------------------------------------------------------
# Model
# ---------------------------------------------------------------------------
def init_params(key):
    """Deterministic init mimicking PyTorch defaults (U(-1/sqrt(fan_in), ...))."""
    def uinit(k, shape, fan_in):
        bound = 1.0 / math.sqrt(fan_in)
        return jax.random.uniform(k, shape, jnp.float32, -bound, bound)

    ks = jax.random.split(key, 10)
    return dict(
        conv1_w=uinit(ks[0], (6, 1, 5, 5), 25),
        conv1_b=uinit(ks[1], (6,), 25),
        conv2_w=uinit(ks[2], (16, 6, 5, 5), 150),
        conv2_b=uinit(ks[3], (16,), 150),
        fc1_w=uinit(ks[4], (120, 400), 400),
        fc1_b=uinit(ks[5], (120,), 400),
        fc2_w=uinit(ks[6], (84, 120), 120),
        fc2_b=uinit(ks[7], (84,), 120),
        fc3_w=uinit(ks[8], (2, 84), 84),
        fc3_b=uinit(ks[9], (2,), 84),
    )


def tutorial_cnn_forward(x, params):
    bsz = x.shape[0]

    # Single layout conversion at the entry; everything stays NHWC afterwards.
    x = jnp.transpose(x, (0, 2, 3, 1))  # (B, 32, 32, 1)

    # conv1 (1->6, 5x5) + ReLU + maxpool : 32x32 -> 28x28 -> 14x14
    h1 = conv_block(x, params["conv1_w"], params["conv1_b"], 14)  # (B,14,14,6)

    # conv2 (6->16, 5x5) + ReLU + maxpool : 14x14 -> 10x10 -> 5x5
    h2 = conv_block(h1, params["conv2_w"], params["conv2_b"], 5)  # (B,5,5,16)

    # Flatten in NHWC (h, w, c) order; fc1's columns are permuted to match
    # torch's (c, h, w) flatten of NCHW, so no activation transpose is needed.
    feat = h2.reshape(bsz, 5 * 5 * 16)

    w1 = (
        params["fc1_w"].reshape(120, 16, 5, 5).transpose(0, 2, 3, 1).reshape(120, 400).T
    )  # (400, 120), columns reordered to (h, w, c)
    w1 = jnp.pad(w1, ((0, 0), (0, LANE - 120)))                       # (400, 128)
    b1 = jnp.pad(params["fc1_b"].reshape(1, 120), ((0, 0), (0, LANE - 120)))
    w2 = jnp.pad(params["fc2_w"].T, ((0, LANE - 120), (0, LANE - 84)))  # (128, 128)
    b2 = jnp.pad(params["fc2_b"].reshape(1, 84), ((0, 0), (0, LANE - 84)))
    w3 = jnp.pad(params["fc3_w"].T, ((0, LANE - 84), (0, LANE - 2)))    # (128, 128)
    b3 = jnp.pad(params["fc3_b"].reshape(1, 2), ((0, 0), (0, LANE - 2)))

    b_rounded = _round_up(bsz, 8)
    tb = min(256, b_rounded)
    b_pad = _round_up(b_rounded, tb)
    feat_pad = jnp.pad(feat, ((0, b_pad - bsz), (0, 0)))

    out = mlp_call(feat_pad, w1, b1, w2, b2, w3, b3, tb)  # (b_pad, 128)
    return out[:bsz, :2]


# ---------------------------------------------------------------------------
# Pure-JAX reference (for correctness verification only)
# ---------------------------------------------------------------------------
def reference_forward(x, p):
    dn = ("NCHW", "OIHW", "NCHW")

    def conv_relu_pool(y, w, b):
        y = lax.conv_general_dilated(y, w, (1, 1), "VALID", dimension_numbers=dn)
        y = jnp.maximum(y + b[None, :, None, None], 0.0)
        return lax.reduce_window(y, -jnp.inf, lax.max, (1, 1, 2, 2), (1, 1, 2, 2), "VALID")

    y = conv_relu_pool(x, p["conv1_w"], p["conv1_b"])
    y = conv_relu_pool(y, p["conv2_w"], p["conv2_b"])
    y = y.reshape(x.shape[0], -1)
    y = jnp.maximum(y @ p["fc1_w"].T + p["fc1_b"], 0.0)
    y = jnp.maximum(y @ p["fc2_w"].T + p["fc2_b"], 0.0)
    return y @ p["fc3_w"].T + p["fc3_b"]


if __name__ == "__main__":
    key = jax.random.PRNGKey(0)
    k_x, k_p = jax.random.split(key)

    # Input implied by fc1 = Linear(16*5*5, ...): single-channel 32x32 images.
    x = jax.random.normal(k_x, (2, 1, 32, 32), dtype=jnp.float32)
    params = init_params(k_p)

    out = jax.jit(tutorial_cnn_forward)(x, params)
    out = jax.block_until_ready(out)

    ref = reference_forward(x, params)
    assert out.shape == (2, 2), out.shape
    assert jnp.allclose(out, ref, atol=1e-4, rtol=1e-4), (out, ref)

    print("KERNEL_OK")
</pallas_src>

<mosaic_0001>
module attributes {stable_mosaic.version = 11 : i64} {
  func.func @conv_pool_kernel(%arg0: i32, %arg1: memref<256x25xf32, #tpu.memory_space<vmem>>, %arg2: memref<256x25xf32, #tpu.memory_space<vmem>>, %arg3: memref<256x25xf32, #tpu.memory_space<vmem>>, %arg4: memref<256x25xf32, #tpu.memory_space<vmem>>, %arg5: memref<25x128xf32, #tpu.memory_space<vmem>>, %arg6: memref<1x128xf32, #tpu.memory_space<vmem>>, %arg7: memref<256x128xf32, #tpu.memory_space<vmem>>) attributes {dimension_semantics = [#tpu.dimension_semantics<parallel>], iteration_bounds = array<i64: 2>, scalar_prefetch = 0 : i64, scratch_operands = 0 : i64, tpu.core_type = #tpu.core_type<tc>, window_params = [{transform_indices = @transform_0, window_bounds = array<i64: 256, 25>}, {transform_indices = @transform_1, window_bounds = array<i64: 256, 25>}, {transform_indices = @transform_2, window_bounds = array<i64: 256, 25>}, {transform_indices = @transform_3, window_bounds = array<i64: 256, 25>}, {pipeline_mode = #tpu.pipeline_mode<synchronous>, transform_indices = @transform_4, window_bounds = array<i64: 25, 128>}, {pipeline_mode = #tpu.pipeline_mode<synchronous>, transform_indices = @transform_5, window_bounds = array<i64: 1, 128>}, {transform_indices = @transform_6, window_bounds = array<i64: 256, 128>}]} {
    %c0 = arith.constant 0 : index
    %c0_0 = arith.constant 0 : index
    %0 = vector.load %arg1[%c0, %c0_0] : memref<256x25xf32, #tpu.memory_space<vmem>>, vector<256x25xf32>
    %c0_1 = arith.constant 0 : index
    %c0_2 = arith.constant 0 : index
    %1 = vector.load %arg2[%c0_1, %c0_2] : memref<256x25xf32, #tpu.memory_space<vmem>>, vector<256x25xf32>
    %c0_3 = arith.constant 0 : index
    %c0_4 = arith.constant 0 : index
    %2 = vector.load %arg3[%c0_3, %c0_4] : memref<256x25xf32, #tpu.memory_space<vmem>>, vector<256x25xf32>
    %c0_5 = arith.constant 0 : index
    %c0_6 = arith.constant 0 : index
    %3 = vector.load %arg4[%c0_5, %c0_6] : memref<256x25xf32, #tpu.memory_space<vmem>>, vector<256x25xf32>
    %4 = tpu.concatenate %0, %1, %2, %3 in 0 : vector<256x25xf32>, vector<256x25xf32>, vector<256x25xf32>, vector<256x25xf32> -> vector<1024x25xf32>
    %c0_7 = arith.constant 0 : index
    %c0_8 = arith.constant 0 : index
    %5 = vector.load %arg5[%c0_7, %c0_8] : memref<25x128xf32, #tpu.memory_space<vmem>>, vector<25x128xf32>
    %cst = arith.constant dense<0.000000e+00> : vector<1024x128xf32>
    %6 = tpu.matmul %4, %5, %cst {dimension_numbers = #tpu.dot_dimension_numbers<[1], [0], [0], [1], [0, 0, 1, 1], [], []>} : vector<1024x25xf32>, vector<25x128xf32>, vector<1024x128xf32> -> vector<1024x128xf32>
    %7 = vector.extract_strided_slice %6 {offsets = [0, 0], sizes = [256, 128], strides = [1, 1]} : vector<1024x128xf32> to vector<256x128xf32>
    %8 = vector.extract_strided_slice %6 {offsets = [256, 0], sizes = [256, 128], strides = [1, 1]} : vector<1024x128xf32> to vector<256x128xf32>
    %9 = arith.maximumf %7, %8 : vector<256x128xf32>
    %10 = vector.extract_strided_slice %6 {offsets = [512, 0], sizes = [256, 128], strides = [1, 1]} : vector<1024x128xf32> to vector<256x128xf32>
    %11 = vector.extract_strided_slice %6 {offsets = [768, 0], sizes = [256, 128], strides = [1, 1]} : vector<1024x128xf32> to vector<256x128xf32>
    %12 = arith.maximumf %10, %11 : vector<256x128xf32>
    %13 = arith.maximumf %9, %12 : vector<256x128xf32>
    %c0_9 = arith.constant 0 : index
    %c0_10 = arith.constant 0 : index
    %14 = vector.load %arg6[%c0_9, %c0_10] : memref<1x128xf32, #tpu.memory_space<vmem>>, vector<1x128xf32>
    %15 = vector.broadcast %14 : vector<1x128xf32> to vector<256x128xf32>
    %16 = arith.addf %13, %15 : vector<256x128xf32>
    %cst_11 = arith.constant 0.000000e+00 : f32
    %17 = vector.broadcast %cst_11 : f32 to vector<256x128xf32>
    %18 = arith.maximumf %16, %17 : vector<256x128xf32>
    %c0_12 = arith.constant 0 : index
    %c0_13 = arith.constant 0 : index
    %19 = vector.load %arg7[%c0_12, %c0_13] : memref<256x128xf32, #tpu.memory_space<vmem>>, vector<256x128xf32>
    tpu.vector_store %arg7[%c0_12, %c0_13], %18 {strides = array<i32>} : memref<256x128xf32, #tpu.memory_space<vmem>>, vector<256x128xf32>,
    return
  }
  func.func @transform_0(%arg0: i32) -> (i32, i32) {
    %c0_i32 = arith.constant 0 : i32
    %c0_i32_0 = arith.constant 0 : i32
    return %arg0, %c0_i32 : i32, i32
  }
  func.func @transform_1(%arg0: i32) -> (i32, i32) {
    %c0_i32 = arith.constant 0 : i32
    %c0_i32_0 = arith.constant 0 : i32
    return %arg0, %c0_i32 : i32, i32
  }
  func.func @transform_2(%arg0: i32) -> (i32, i32) {
    %c0_i32 = arith.constant 0 : i32
    %c0_i32_0 = arith.constant 0 : i32
    return %arg0, %c0_i32 : i32, i32
  }
  func.func @transform_3(%arg0: i32) -> (i32, i32) {
    %c0_i32 = arith.constant 0 : i32
    %c0_i32_0 = arith.constant 0 : i32
    return %arg0, %c0_i32 : i32, i32
  }
  func.func @transform_4(%arg0: i32) -> (i32, i32) {
    %c0_i32 = arith.constant 0 : i32
    %c0_i32_0 = arith.constant 0 : i32
    %c0_i32_1 = arith.constant 0 : i32
    return %c0_i32, %c0_i32_0 : i32, i32
  }
  func.func @transform_5(%arg0: i32) -> (i32, i32) {
    %c0_i32 = arith.constant 0 : i32
    %c0_i32_0 = arith.constant 0 : i32
    %c0_i32_1 = arith.constant 0 : i32
    return %c0_i32, %c0_i32_0 : i32, i32
  }
  func.func @transform_6(%arg0: i32) -> (i32, i32) {
    %c0_i32 = arith.constant 0 : i32
    %c0_i32_0 = arith.constant 0 : i32
    return %arg0, %c0_i32 : i32, i32
  }
}

module attributes {stable_mosaic.version = 11 : i64} {
  func.func @conv_pool_kernel(%arg0: i32, %arg1: memref<56x150xf32, #tpu.memory_space<vmem>>, %arg2: memref<56x150xf32, #tpu.memory_space<vmem>>, %arg3: memref<56x150xf32, #tpu.memory_space<vmem>>, %arg4: memref<56x150xf32, #tpu.memory_space<vmem>>, %arg5: memref<150x128xf32, #tpu.memory_space<vmem>>, %arg6: memref<1x128xf32, #tpu.memory_space<vmem>>, %arg7: memref<56x128xf32, #tpu.memory_space<vmem>>) attributes {dimension_semantics = [#tpu.dimension_semantics<parallel>], iteration_bounds = array<i64: 1>, scalar_prefetch = 0 : i64, scratch_operands = 0 : i64, tpu.core_type = #tpu.core_type<tc>, window_params = [{transform_indices = @transform_0, window_bounds = array<i64: 56, 150>}, {transform_indices = @transform_1, window_bounds = array<i64: 56, 150>}, {transform_indices = @transform_2, window_bounds = array<i64: 56, 150>}, {transform_indices = @transform_3, window_bounds = array<i64: 56, 150>}, {pipeline_mode = #tpu.pipeline_mode<synchronous>, transform_indices = @transform_4, window_bounds = array<i64: 150, 128>}, {pipeline_mode = #tpu.pipeline_mode<synchronous>, transform_indices = @transform_5, window_bounds = array<i64: 1, 128>}, {transform_indices = @transform_6, window_bounds = array<i64: 56, 128>}]} {
    %c0 = arith.constant 0 : index
    %c0_0 = arith.constant 0 : index
    %0 = vector.load %arg1[%c0, %c0_0] : memref<56x150xf32, #tpu.memory_space<vmem>>, vector<56x150xf32>
    %c0_1 = arith.constant 0 : index
    %c0_2 = arith.constant 0 : index
    %1 = vector.load %arg2[%c0_1, %c0_2] : memref<56x150xf32, #tpu.memory_space<vmem>>, vector<56x150xf32>
    %c0_3 = arith.constant 0 : index
    %c0_4 = arith.constant 0 : index
    %2 = vector.load %arg3[%c0_3, %c0_4] : memref<56x150xf32, #tpu.memory_space<vmem>>, vector<56x150xf32>
    %c0_5 = arith.constant 0 : index
    %c0_6 = arith.constant 0 : index
    %3 = vector.load %arg4[%c0_5, %c0_6] : memref<56x150xf32, #tpu.memory_space<vmem>>, vector<56x150xf32>
    %4 = tpu.concatenate %0, %1, %2, %3 in 0 : vector<56x150xf32>, vector<56x150xf32>, vector<56x150xf32>, vector<56x150xf32> -> vector<224x150xf32>
    %c0_7 = arith.constant 0 : index
    %c0_8 = arith.constant 0 : index
    %5 = vector.load %arg5[%c0_7, %c0_8] : memref<150x128xf32, #tpu.memory_space<vmem>>, vector<150x128xf32>
    %cst = arith.constant dense<0.000000e+00> : vector<224x128xf32>
    %6 = tpu.matmul %4, %5, %cst {dimension_numbers = #tpu.dot_dimension_numbers<[1], [0], [0], [1], [0, 0, 1, 1], [], []>} : vector<224x150xf32>, vector<150x128xf32>, vector<224x128xf32> -> vector<224x128xf32>
    %7 = vector.extract_strided_slice %6 {offsets = [0, 0], sizes = [56, 128], strides = [1, 1]} : vector<224x128xf32> to vector<56x128xf32>
    %8 = vector.extract_strided_slice %6 {offsets = [56, 0], sizes = [56, 128], strides = [1, 1]} : vector<224x128xf32> to vector<56x128xf32>
    %9 = arith.maximumf %7, %8 : vector<56x128xf32>
    %10 = vector.extract_strided_slice %6 {offsets = [112, 0], sizes = [56, 128], strides = [1, 1]} : vector<224x128xf32> to vector<56x128xf32>
    %11 = vector.extract_strided_slice %6 {offsets = [168, 0], sizes = [56, 128], strides = [1, 1]} : vector<224x128xf32> to vector<56x128xf32>
    %12 = arith.maximumf %10, %11 : vector<56x128xf32>
    %13 = arith.maximumf %9, %12 : vector<56x128xf32>
    %c0_9 = arith.constant 0 : index
    %c0_10 = arith.constant 0 : index
    %14 = vector.load %arg6[%c0_9, %c0_10] : memref<1x128xf32, #tpu.memory_space<vmem>>, vector<1x128xf32>
    %15 = vector.broadcast %14 : vector<1x128xf32> to vector<56x128xf32>
    %16 = arith.addf %13, %15 : vector<56x128xf32>
    %cst_11 = arith.constant 0.000000e+00 : f32
    %17 = vector.broadcast %cst_11 : f32 to vector<56x128xf32>
    %18 = arith.maximumf %16, %17 : vector<56x128xf32>
    %c0_12 = arith.constant 0 : index
    %c0_13 = arith.constant 0 : index
    %19 = vector.load %arg7[%c0_12, %c0_13] : memref<56x128xf32, #tpu.memory_space<vmem>>, vector<56x128xf32>
    tpu.vector_store %arg7[%c0_12, %c0_13], %18 {strides = array<i32>} : memref<56x128xf32, #tpu.memory_space<vmem>>, vector<56x128xf32>,
    return
  }
  func.func @transform_0(%arg0: i32) -> (i32, i32) {
    %c0_i32 = arith.constant 0 : i32
    %c0_i32_0 = arith.constant 0 : i32
    return %arg0, %c0_i32 : i32, i32
  }
  func.func @transform_1(%arg0: i32) -> (i32, i32) {
    %c0_i32 = arith.constant 0 : i32
    %c0_i32_0 = arith.constant 0 : i32
    return %arg0, %c0_i32 : i32, i32
  }
  func.func @transform_2(%arg0: i32) -> (i32, i32) {
    %c0_i32 = arith.constant 0 : i32
    %c0_i32_0 = arith.constant 0 : i32
    return %arg0, %c0_i32 : i32, i32
  }
  func.func @transform_3(%arg0: i32) -> (i32, i32) {
    %c0_i32 = arith.constant 0 : i32
    %c0_i32_0 = arith.constant 0 : i32
    return %arg0, %c0_i32 : i32, i32
  }
  func.func @transform_4(%arg0: i32) -> (i32, i32) {
    %c0_i32 = arith.constant 0 : i32
    %c0_i32_0 = arith.constant 0 : i32
    %c0_i32_1 = arith.constant 0 : i32
    return %c0_i32, %c0_i32_0 : i32, i32
  }
  func.func @transform_5(%arg0: i32) -> (i32, i32) {
    %c0_i32 = arith.constant 0 : i32
    %c0_i32_0 = arith.constant 0 : i32
    %c0_i32_1 = arith.constant 0 : i32
    return %c0_i32, %c0_i32_0 : i32, i32
  }
  func.func @transform_6(%arg0: i32) -> (i32, i32) {
    %c0_i32 = arith.constant 0 : i32
    %c0_i32_0 = arith.constant 0 : i32
    return %arg0, %c0_i32 : i32, i32
  }
}

module attributes {stable_mosaic.version = 11 : i64} {
  func.func @mlp_kernel(%arg0: i32, %arg1: memref<8x400xf32, #tpu.memory_space<vmem>>, %arg2: memref<400x128xf32, #tpu.memory_space<vmem>>, %arg3: memref<1x128xf32, #tpu.memory_space<vmem>>, %arg4: memref<128x128xf32, #tpu.memory_space<vmem>>, %arg5: memref<1x128xf32, #tpu.memory_space<vmem>>, %arg6: memref<128x128xf32, #tpu.memory_space<vmem>>, %arg7: memref<1x128xf32, #tpu.memory_space<vmem>>, %arg8: memref<8x128xf32, #tpu.memory_space<vmem>>) attributes {dimension_semantics = [#tpu.dimension_semantics<parallel>], iteration_bounds = array<i64: 1>, scalar_prefetch = 0 : i64, scratch_operands = 0 : i64, tpu.core_type = #tpu.core_type<tc>, window_params = [{transform_indices = @transform_0, window_bounds = array<i64: 8, 400>}, {pipeline_mode = #tpu.pipeline_mode<synchronous>, transform_indices = @transform_1, window_bounds = array<i64: 400, 128>}, {pipeline_mode = #tpu.pipeline_mode<synchronous>, transform_indices = @transform_2, window_bounds = array<i64: 1, 128>}, {pipeline_mode = #tpu.pipeline_mode<synchronous>, transform_indices = @transform_3, window_bounds = array<i64: 128, 128>}, {pipeline_mode = #tpu.pipeline_mode<synchronous>, transform_indices = @transform_4, window_bounds = array<i64: 1, 128>}, {pipeline_mode = #tpu.pipeline_mode<synchronous>, transform_indices = @transform_5, window_bounds = array<i64: 128, 128>}, {pipeline_mode = #tpu.pipeline_mode<synchronous>, transform_indices = @transform_6, window_bounds = array<i64: 1, 128>}, {transform_indices = @transform_7, window_bounds = array<i64: 8, 128>}]} {
    %c0 = arith.constant 0 : index
    %c0_0 = arith.constant 0 : index
    %0 = vector.load %arg1[%c0, %c0_0] : memref<8x400xf32, #tpu.memory_space<vmem>>, vector<8x400xf32>
    %c0_1 = arith.constant 0 : index
    %c0_2 = arith.constant 0 : index
    %1 = vector.load %arg2[%c0_1, %c0_2] : memref<400x128xf32, #tpu.memory_space<vmem>>, vector<400x128xf32>
    %cst = arith.constant dense<0.000000e+00> : vector<8x128xf32>
    %2 = tpu.matmul %0, %1, %cst {dimension_numbers = #tpu.dot_dimension_numbers<[1], [0], [0], [1], [0, 0, 1, 1], [], []>} : vector<8x400xf32>, vector<400x128xf32>, vector<8x128xf32> -> vector<8x128xf32>
    %c0_3 = arith.constant 0 : index
    %c0_4 = arith.constant 0 : index
    %3 = vector.load %arg3[%c0_3, %c0_4] : memref<1x128xf32, #tpu.memory_space<vmem>>, vector<1x128xf32>
    %4 = vector.broadcast %3 : vector<1x128xf32> to vector<8x128xf32>
    %5 = arith.addf %2, %4 : vector<8x128xf32>
    %cst_5 = arith.constant 0.000000e+00 : f32
    %6 = vector.broadcast %cst_5 : f32 to vector<8x128xf32>
    %7 = arith.maximumf %5, %6 : vector<8x128xf32>
    %c0_6 = arith.constant 0 : index
    %c0_7 = arith.constant 0 : index
    %8 = vector.load %arg4[%c0_6, %c0_7] : memref<128x128xf32, #tpu.memory_space<vmem>>, vector<128x128xf32>
    %cst_8 = arith.constant dense<0.000000e+00> : vector<8x128xf32>
    %9 = tpu.matmul %7, %8, %cst_8 {dimension_numbers = #tpu.dot_dimension_numbers<[1], [0], [0], [1], [0, 0, 1, 1], [], []>} : vector<8x128xf32>, vector<128x128xf32>, vector<8x128xf32> -> vector<8x128xf32>
    %c0_9 = arith.constant 0 : index
    %c0_10 = arith.constant 0 : index
    %10 = vector.load %arg5[%c0_9, %c0_10] : memref<1x128xf32, #tpu.memory_space<vmem>>, vector<1x128xf32>
    %11 = vector.broadcast %10 : vector<1x128xf32> to vector<8x128xf32>
    %12 = arith.addf %9, %11 : vector<8x128xf32>
    %cst_11 = arith.constant 0.000000e+00 : f32
    %13 = vector.broadcast %cst_11 : f32 to vector<8x128xf32>
    %14 = arith.maximumf %12, %13 : vector<8x128xf32>
    %c0_12 = arith.constant 0 : index
    %c0_13 = arith.constant 0 : index
    %15 = vector.load %arg6[%c0_12, %c0_13] : memref<128x128xf32, #tpu.memory_space<vmem>>, vector<128x128xf32>
    %cst_14 = arith.constant dense<0.000000e+00> : vector<8x128xf32>
    %16 = tpu.matmul %14, %15, %cst_14 {dimension_numbers = #tpu.dot_dimension_numbers<[1], [0], [0], [1], [0, 0, 1, 1], [], []>} : vector<8x128xf32>, vector<128x128xf32>, vector<8x128xf32> -> vector<8x128xf32>
    %c0_15 = arith.constant 0 : index
    %c0_16 = arith.constant 0 : index
    %17 = vector.load %arg7[%c0_15, %c0_16] : memref<1x128xf32, #tpu.memory_space<vmem>>, vector<1x128xf32>
    %18 = vector.broadcast %17 : vector<1x128xf32> to vector<8x128xf32>
    %19 = arith.addf %16, %18 : vector<8x128xf32>
    %c0_17 = arith.constant 0 : index
    %c0_18 = arith.constant 0 : index
    %20 = vector.load %arg8[%c0_17, %c0_18] : memref<8x128xf32, #tpu.memory_space<vmem>>, vector<8x128xf32>
    tpu.vector_store %arg8[%c0_17, %c0_18], %19 {strides = array<i32>} : memref<8x128xf32, #tpu.memory_space<vmem>>, vector<8x128xf32>,
    return
  }
  func.func @transform_0(%arg0: i32) -> (i32, i32) {
    %c0_i32 = arith.constant 0 : i32
    %c0_i32_0 = arith.constant 0 : i32
    return %arg0, %c0_i32 : i32, i32
  }
  func.func @transform_1(%arg0: i32) -> (i32, i32) {
    %c0_i32 = arith.constant 0 : i32
    %c0_i32_0 = arith.constant 0 : i32
    %c0_i32_1 = arith.constant 0 : i32
    return %c0_i32, %c0_i32_0 : i32, i32
  }
  func.func @transform_2(%arg0: i32) -> (i32, i32) {
    %c0_i32 = arith.constant 0 : i32
    %c0_i32_0 = arith.constant 0 : i32
    %c0_i32_1 = arith.constant 0 : i32
    return %c0_i32, %c0_i32_0 : i32, i32
  }
  func.func @transform_3(%arg0: i32) -> (i32, i32) {
    %c0_i32 = arith.constant 0 : i32
    %c0_i32_0 = arith.constant 0 : i32
    %c0_i32_1 = arith.constant 0 : i32
    return %c0_i32, %c0_i32_0 : i32, i32
  }
  func.func @transform_4(%arg0: i32) -> (i32, i32) {
    %c0_i32 = arith.constant 0 : i32
    %c0_i32_0 = arith.constant 0 : i32
    %c0_i32_1 = arith.constant 0 : i32
    return %c0_i32, %c0_i32_0 : i32, i32
  }
  func.func @transform_5(%arg0: i32) -> (i32, i32) {
    %c0_i32 = arith.constant 0 : i32
    %c0_i32_0 = arith.constant 0 : i32
    %c0_i32_1 = arith.constant 0 : i32
    return %c0_i32, %c0_i32_0 : i32, i32
  }
  func.func @transform_6(%arg0: i32) -> (i32, i32) {
    %c0_i32 = arith.constant 0 : i32
    %c0_i32_0 = arith.constant 0 : i32
    %c0_i32_1 = arith.constant 0 : i32
    return %c0_i32, %c0_i32_0 : i32, i32
  }
  func.func @transform_7(%arg0: i32) -> (i32, i32) {
    %c0_i32 = arith.constant 0 : i32
    %c0_i32_0 = arith.constant 0 : i32
    return %arg0, %c0_i32 : i32, i32
  }
}

</mosaic_0001>

<bundles_post_ra>
// kernel: tutorial_cnn_forward.3
= control target key start
LH: loop header
LB: loop body
LE: loop exit
PB: predicated region body
PF: predicated region fallthrough
CT: control target
= control target key end

     0   :  { %s2376_s21 = smov 0   ;;  %s2948_s0 = inlined_call_operand.vmem [shape: f32[512,25], index: 0, kind: input, shape index: {}]   ;;  %s2949_s1 = inlined_call_operand.vmem [shape: f32[512,25], index: 1, kind: input, shape index: {}]   ;;  %s2950_s2 = inlined_call_operand.vmem [shape: f32[512,25], index: 2, kind: input, shape index: {}]   ;;  %s2951_s3 = inlined_call_operand.vmem [shape: f32[512,25], index: 3, kind: input, shape index: {}]   ;;  %s2952_s4 = inlined_call_operand.vmem [shape: f32[25,128], index: 4, kind: input, shape index: {}]   ;;  %s2953_s5 = inlined_call_operand.vmem [shape: f32[1,128], index: 5, kind: input, shape index: {}]   ;;  %s2954_s6 = inlined_call_operand.vmem [shape: f32[512,128], index: 6, kind: output, shape index: {}]  }
   0x1 LB: > { %s1838_s22 = sadd.s32 4294967295, %s2339_s21   ;;  %p1842_p0 = scmp.ge.s32.totalorder %s2339_s21, 1  ;;  %s2339_s21 = sphi %s2376_s21, %s16_s21  }
   0x2   : > { %p246_p1 = scmp.lt.s32.totalorder %s2339_s21, 3 }
   0x4   : > { %p247_p2 = pnand %p1842_p0, %p246_p1 }
   0x6   : > { %250 = sbr.rel (%p247_p2) target bundleno = 350 (0x15e), region = 44 }
   0xb   : > { %v452_v0 = vld [vmem:[%s2952_s4 + $0x18] sm:$0x1]  ;;  %vm838_vm0 = vcmask 1040384   ;;  %v451_v1 = vld [vmem:[%s2952_s4 + $0x10] sm:$0xff]  ;;  %s1843_s27 = sshll.u32 %s1838_s22, 5  ;;  %v450_v2 = vld [vmem:[%s2952_s4 + $0x8] sm:$0xff] }
   0xc   : > { %2117 = vmatprep.subr.msk.mxu0 %vm838_vm0, %v452_v0  ;;  %2317 = vmatprep.subr.msk.mxu1 %vm838_vm0, %v452_v0  ;;  %p292_p3 = scmp.lt.s32.totalorder %s1843_s27, 63  ;;  %v449_v3 = vld [vmem:[%s2952_s4] sm:$0xff]  ;;  %vm453_vm1 = vcmask 203776  }
   0xd   : > { %2118 = vmatpush3.msk.msra.mxu0 %vm838_vm0, %v452_v0  ;;  %2321 = vmatpush3.msk.msra.mxu1 %vm838_vm0, %v452_v0 }
   0xe   : > { %2119 = vmatprep.subr.mxu0 %v451_v1  ;;  %2318 = vmatprep.subr.mxu1 %v451_v1  ;;  %s2984_s27 = smov (!%p292_p3, %s1843_s27), 63 }
   0xf   : > { %2120 = vmatpush3.msra.mxu0 %v451_v1  ;;  %2322 = vmatpush3.msra.mxu1 %v451_v1  ;;  %s2396_s8 = sshll.u32 %s2984_s27, 3 }
  0x10   : > { %2121 = vmatprep.subr.mxu0 %v450_v2  ;;  %2319 = vmatprep.subr.mxu1 %v450_v2  ;;  %s2402_s11 = scalar_lea.vmem %s2948_s0, %s2396_s8  ;;  %s2408_s14 = scalar_lea.vmem %s2950_s2, %s2396_s8 }
  0x11   : > { %2122 = vmatpush3.msra.mxu0 %v450_v2  ;;  %2323 = vmatpush3.msra.mxu1 %v450_v2  ;;  %v321_v4 = vld [vmem:[%s2402_s11] sm:$0xff]  ;;  %v322_v6 = vld [vmem:[%s2402_s11 + $0x8] sm:$0xff]  ;;  %v323_v8 = vld [vmem:[%s2402_s11 + $0x10] sm:$0xff]  ;;  %s2534_s17 = scalar_lea.vmem %s2949_s1, %s2396_s8  ;;  %s2540_s20 = scalar_lea.vmem %s2951_s3, %s2396_s8 }
  0x12   : > { %2123 = vmatprep.subr.mxu0 %v449_v3  ;;  %2320 = vmatprep.subr.mxu1 %v449_v3  ;;  %v385_v5 = vld [vmem:[%s2408_s14] sm:$0xff]  ;;  %v386_v7 = vld [vmem:[%s2408_s14 + $0x8] sm:$0xff]  ;;  %v387_v9 = vld [vmem:[%s2408_s14 + $0x10] sm:$0xff]  ;;  %s2822_s26 = scalar_lea.vmem %s2954_s6, %s2396_s8 }
  0x13   : > { %2124 = vmatpush3.msra.mxu0 %v449_v3  ;;  %2324 = vmatpush3.msra.mxu1 %v449_v3  ;;  %v324_v10 = vld [vmem:[%s2402_s11 + $0x18] sm:$0xff]  ;;  %v325_v12 = vld [vmem:[%s2402_s11 + $0x20] sm:$0xff]  ;;  %v326_v14 = vld [vmem:[%s2402_s11 + $0x28] sm:$0xff] }
  0x14   : > { %2125 = vmatprep.mubr.msk.f32.mxu0 %vm453_vm1, %v321_v4  ;;  %2221 = vmatprep.mubr.msk.f32.mxu1 %vm453_vm1, %v385_v5  ;;  %v388_v11 = vld [vmem:[%s2408_s14 + $0x18] sm:$0xff]  ;;  %v389_v13 = vld [vmem:[%s2408_s14 + $0x20] sm:$0xff]  ;;  %v390_v15 = vld [vmem:[%s2408_s14 + $0x28] sm:$0xff] }
  0x15   : > { %2126 = vmatmul.mubr.msk.f32.vlgmr.msra.gmra.mxu0 %vm453_vm1, %v322_v6  ;;  %2222 = vmatmul.mubr.msk.f32.vlgmr.msra.gmra.mxu1 %vm453_vm1, %v386_v7  ;;  %v327_v16 = vld [vmem:[%s2402_s11 + $0x30] sm:$0xff]  ;;  %v328_v18 = vld [vmem:[%s2402_s11 + $0x38] sm:$0xff]  ;;  %v329_v20 = vld [vmem:[%s2402_s11 + $0x40] sm:$0xff] }
  0x16   : > { %2128 = vmatprep.mubr.msk.f32.mxu0 %vm453_vm1, %v323_v8  ;;  %2224 = vmatprep.mubr.msk.f32.mxu1 %vm453_vm1, %v387_v9  ;;  %v391_v17 = vld [vmem:[%s2408_s14 + $0x30] sm:$0xff]  ;;  %v392_v19 = vld [vmem:[%s2408_s14 + $0x38] sm:$0xff]  ;;  %v393_v21 = vld [vmem:[%s2408_s14 + $0x40] sm:$0xff] }
  0x17   : > { %v330_v22 = vld [vmem:[%s2402_s11 + $0x48] sm:$0xff]  ;;  %v331_v24 = vld [vmem:[%s2402_s11 + $0x50] sm:$0xff]  ;;  %v332_v26 = vld [vmem:[%s2402_s11 + $0x58] sm:$0xff] }
  0x18   : > { %v394_v23 = vld [vmem:[%s2408_s14 + $0x48] sm:$0xff]  ;;  %v395_v25 = vld [vmem:[%s2408_s14 + $0x50] sm:$0xff]  ;;  %v396_v27 = vld [vmem:[%s2408_s14 + $0x58] sm:$0xff] }
  0x19   : > { %2129 = vmatmul.mubr.msk.f32.gmra.mxu0 %vm453_vm1, %v324_v10  ;;  %2225 = vmatmul.mubr.msk.f32.gmra.mxu1 %vm453_vm1, %v388_v11  ;;  %v333_v28 = vld [vmem:[%s2402_s11 + $0x60] sm:$0xff]  ;;  %v334_v30 = vld [vmem:[%s2402_s11 + $0x68] sm:$0xff]  ;;  %v335_v32 = vld [vmem:[%s2402_s11 + $0x70] sm:$0xff] }
  0x1a   : > { %2131 = vmatprep.mubr.msk.f32.mxu0 %vm453_vm1, %v325_v12  ;;  %2227 = vmatprep.mubr.msk.f32.mxu1 %vm453_vm1, %v389_v13  ;;  %v397_v29 = vld [vmem:[%s2408_s14 + $0x60] sm:$0xff]  ;;  %v398_v31 = vld [vmem:[%s2408_s14 + $0x68] sm:$0xff]  ;;  %v399_v33 = vld [vmem:[%s2408_s14 + $0x70] sm:$0xff] }
  0x1b   : > { %v336_v34 = vld [vmem:[%s2402_s11 + $0x78] sm:$0xff]  ;;  %v337_v36 = vld [vmem:[%s2402_s11 + $0x80] sm:$0xff]  ;;  %v338_v38 = vld [vmem:[%s2402_s11 + $0x88] sm:$0xff] }
  0x1c   : > { %v400_v35 = vld [vmem:[%s2408_s14 + $0x78] sm:$0xff]  ;;  %v401_v37 = vld [vmem:[%s2408_s14 + $0x80] sm:$0xff]  ;;  %v402_v39 = vld [vmem:[%s2408_s14 + $0x88] sm:$0xff] }
  0x1d   : > { %2132 = vmatmul.mubr.msk.f32.gmra.mxu0 %vm453_vm1, %v326_v14  ;;  %2228 = vmatmul.mubr.msk.f32.gmra.mxu1 %vm453_vm1, %v390_v15  ;;  %v339_v40 = vld [vmem:[%s2402_s11 + $0x90] sm:$0xff]  ;;  %v340_v42 = vld [vmem:[%s2402_s11 + $0x98] sm:$0xff]  ;;  %v341_v44 = vld [vmem:[%s2402_s11 + $0xa0] sm:$0xff] }
  0x1e   : > { %2134 = vmatprep.mubr.msk.f32.mxu0 %vm453_vm1, %v327_v16  ;;  %2230 = vmatprep.mubr.msk.f32.mxu1 %vm453_vm1, %v391_v17  ;;  %v403_v41 = vld [vmem:[%s2408_s14 + $0x90] sm:$0xff]  ;;  %v404_v43 = vld [vmem:[%s2408_s14 + $0x98] sm:$0xff]  ;;  %v405_v45 = vld [vmem:[%s2408_s14 + $0xa0] sm:$0xff] }
  0x1f   : > { %v342_v46 = vld [vmem:[%s2402_s11 + $0xa8] sm:$0xff]  ;;  %v343_v48 = vld [vmem:[%s2402_s11 + $0xb0] sm:$0xff]  ;;  %v344_v50 = vld [vmem:[%s2402_s11 + $0xb8] sm:$0xff] }
  0x20   : > { %v406_v47 = vld [vmem:[%s2408_s14 + $0xa8] sm:$0xff]  ;;  %v407_v49 = vld [vmem:[%s2408_s14 + $0xb0] sm:$0xff]  ;;  %v408_v51 = vld [vmem:[%s2408_s14 + $0xb8] sm:$0xff] }
  0x21   : > { %2135 = vmatmul.mubr.msk.f32.gmra.mxu0 %vm453_vm1, %v328_v18  ;;  %2231 = vmatmul.mubr.msk.f32.gmra.mxu1 %vm453_vm1, %v392_v19  ;;  %v345_v52 = vld [vmem:[%s2402_s11 + $0xc0] sm:$0xff]  ;;  %v346_v54 = vld [vmem:[%s2402_s11 + $0xc8] sm:$0xff]  ;;  %v347_v56 = vld [vmem:[%s2402_s11 + $0xd0] sm:$0xff] }
  0x22   : > { %2137 = vmatprep.mubr.msk.f32.mxu0 %vm453_vm1, %v329_v20  ;;  %2233 = vmatprep.mubr.msk.f32.mxu1 %vm453_vm1, %v393_v21  ;;  %v409_v53 = vld [vmem:[%s2408_s14 + $0xc0] sm:$0xff]  ;;  %v410_v55 = vld [vmem:[%s2408_s14 + $0xc8] sm:$0xff]  ;;  %v411_v57 = vld [vmem:[%s2408_s14 + $0xd0] sm:$0xff] }
  0x23   : > { %v348_v58 = vld [vmem:[%s2402_s11 + $0xd8] sm:$0xff]  ;;  %v349_v60 = vld [vmem:[%s2402_s11 + $0xe0] sm:$0xff]  ;;  %v350_v62 = vld [vmem:[%s2402_s11 + $0xe8] sm:$0xff] }
  0x24   : > { %v412_v59 = vld [vmem:[%s2408_s14 + $0xd8] sm:$0xff]  ;;  %v413_v61 = vld [vmem:[%s2408_s14 + $0xe0] sm:$0xff]  ;;  %v414_v63 = vld [vmem:[%s2408_s14 + $0xe8] sm:$0xff] }
  0x25   : > { %2138 = vmatmul.mubr.msk.f32.gmra.mxu0 %vm453_vm1, %v330_v22  ;;  %2234 = vmatmul.mubr.msk.f32.gmra.mxu1 %vm453_vm1, %v394_v23  ;;  %v351_v0 = vld [vmem:[%s2402_s11 + $0xf0] sm:$0xff]  ;;  %v352_v2 = vld [vmem:[%s2402_s11 + $0xf8] sm:$0xff]  ;;  %v353_v4 = vld [vmem:[%s2534_s17] sm:$0xff] }
  0x26   : > { %2140 = vmatprep.mubr.msk.f32.mxu0 %vm453_vm1, %v331_v24  ;;  %2236 = vmatprep.mubr.msk.f32.mxu1 %vm453_vm1, %v395_v25  ;;  %v415_v1 = vld [vmem:[%s2408_s14 + $0xf0] sm:$0xff]  ;;  %v416_v3 = vld [vmem:[%s2408_s14 + $0xf8] sm:$0xff]  ;;  %v417_v5 = vld [vmem:[%s2540_s20] sm:$0xff] }
  0x27   : > { %v354_v6 = vld [vmem:[%s2534_s17 + $0x8] sm:$0xff]  ;;  %v355_v8 = vld [vmem:[%s2534_s17 + $0x10] sm:$0xff]  ;;  %v356_v10 = vld [vmem:[%s2534_s17 + $0x18] sm:$0xff] }
  0x28   : > { %v418_v7 = vld [vmem:[%s2540_s20 + $0x8] sm:$0xff]  ;;  %v419_v9 = vld [vmem:[%s2540_s20 + $0x10] sm:$0xff]  ;;  %v420_v11 = vld [vmem:[%s2540_s20 + $0x18] sm:$0xff] }
  0x29   : > { %2141 = vmatmul.mubr.msk.f32.gmra.mxu0 %vm453_vm1, %v332_v26  ;;  %2237 = vmatmul.mubr.msk.f32.gmra.mxu1 %vm453_vm1, %v396_v27  ;;  %v357_v12 = vld [vmem:[%s2534_s17 + $0x20] sm:$0xff]  ;;  %v358_v14 = vld [vmem:[%s2534_s17 + $0x28] sm:$0xff]  ;;  %v359_v16 = vld [vmem:[%s2534_s17 + $0x30] sm:$0xff] }
  0x2a   : > { %2143 = vmatprep.mubr.msk.f32.mxu0 %vm453_vm1, %v333_v28  ;;  %2239 = vmatprep.mubr.msk.f32.mxu1 %vm453_vm1, %v397_v29  ;;  %v421_v13 = vld [vmem:[%s2540_s20 + $0x20] sm:$0xff]  ;;  %v422_v15 = vld [vmem:[%s2540_s20 + $0x28] sm:$0xff]  ;;  %v423_v17 = vld [vmem:[%s2540_s20 + $0x30] sm:$0xff] }
  0x2b   : > { %v360_v18 = vld [vmem:[%s2534_s17 + $0x38] sm:$0xff]  ;;  %v361_v20 = vld [vmem:[%s2534_s17 + $0x40] sm:$0xff]  ;;  %v362_v22 = vld [vmem:[%s2534_s17 + $0x48] sm:$0xff] }
  0x2c   : > { %v424_v19 = vld [vmem:[%s2540_s20 + $0x38] sm:$0xff]  ;;  %v425_v21 = vld [vmem:[%s2540_s20 + $0x40] sm:$0xff]  ;;  %v426_v23 = vld [vmem:[%s2540_s20 + $0x48] sm:$0xff] }
  0x2d   : > { %2144 = vmatmul.mubr.msk.f32.gmra.mxu0 %vm453_vm1, %v334_v30  ;;  %2240 = vmatmul.mubr.msk.f32.gmra.mxu1 %vm453_vm1, %v398_v31  ;;  %v363_v24 = vld [vmem:[%s2534_s17 + $0x50] sm:$0xff]  ;;  %v364_v26 = vld [vmem:[%s2534_s17 + $0x58] sm:$0xff]  ;;  %v365_v28 = vld [vmem:[%s2534_s17 + $0x60] sm:$0xff] }
  0x2e   : > { %2146 = vmatprep.mubr.msk.f32.mxu0 %vm453_vm1, %v335_v32  ;;  %2242 = vmatprep.mubr.msk.f32.mxu1 %vm453_vm1, %v399_v33  ;;  %v427_v25 = vld [vmem:[%s2540_s20 + $0x50] sm:$0xff]  ;;  %v428_v27 = vld [vmem:[%s2540_s20 + $0x58] sm:$0xff]  ;;  %v429_v29 = vld [vmem:[%s2540_s20 + $0x60] sm:$0xff] }
  0x2f   : > { %v366_v30 = vld [vmem:[%s2534_s17 + $0x68] sm:$0xff]  ;;  %v367_v32 = vld [vmem:[%s2534_s17 + $0x70] sm:$0xff] }
  0x30   : > { %v430_v31 = vld [vmem:[%s2540_s20 + $0x68] sm:$0xff]  ;;  %v431_v33 = vld [vmem:[%s2540_s20 + $0x70] sm:$0xff] }
  0x31   : > { %2147 = vmatmul.mubr.msk.f32.gmra.mxu0 %vm453_vm1, %v336_v34  ;;  %2243 = vmatmul.mubr.msk.f32.gmra.mxu1 %vm453_vm1, %v400_v35  ;;  %v368_v34 = vld [vmem:[%s2534_s17 + $0x78] sm:$0xff] }
  0x32   : > { %2149 = vmatprep.mubr.msk.f32.mxu0 %vm453_vm1, %v337_v36  ;;  %2245 = vmatprep.mubr.msk.f32.mxu1 %vm453_vm1, %v401_v37  ;;  %v432_v35 = vld [vmem:[%s2540_s20 + $0x78] sm:$0xff]  ;;  %v369_v36 = vld [vmem:[%s2534_s17 + $0x80] sm:$0xff] }
  0x33   : > { %v433_v37 = vld [vmem:[%s2540_s20 + $0x80] sm:$0xff] }
  0x35   : > { %2150 = vmatmul.mubr.msk.f32.gmra.mxu0 %vm453_vm1, %v338_v38  ;;  %2246 = vmatmul.mubr.msk.f32.gmra.mxu1 %vm453_vm1, %v402_v39  ;;  %v370_v38 = vld [vmem:[%s2534_s17 + $0x88] sm:$0xff] }
  0x36   : > { %2152 = vmatprep.mubr.msk.f32.mxu0 %vm453_vm1, %v339_v40  ;;  %2248 = vmatprep.mubr.msk.f32.mxu1 %vm453_vm1, %v403_v41  ;;  %v434_v39 = vld [vmem:[%s2540_s20 + $0x88] sm:$0xff]  ;;  %v371_v40 = vld [vmem:[%s2534_s17 + $0x90] sm:$0xff] }
  0x37   : > { %v435_v41 = vld [vmem:[%s2540_s20 + $0x90] sm:$0xff] }
  0x39   : > { %2153 = vmatmul.mubr.msk.f32.gmra.mxu0 %vm453_vm1, %v340_v42  ;;  %2249 = vmatmul.mubr.msk.f32.gmra.mxu1 %vm453_vm1, %v404_v43  ;;  %v372_v42 = vld [vmem:[%s2534_s17 + $0x98] sm:$0xff] }
  0x3a   : > { %2155 = vmatprep.mubr.msk.f32.mxu0 %vm453_vm1, %v341_v44  ;;  %2251 = vmatprep.mubr.msk.f32.mxu1 %vm453_vm1, %v405_v45  ;;  %v436_v43 = vld [vmem:[%s2540_s20 + $0x98] sm:$0xff]  ;;  %v373_v44 = vld [vmem:[%s2534_s17 + $0xa0] sm:$0xff] }
  0x3b   : > { %v437_v45 = vld [vmem:[%s2540_s20 + $0xa0] sm:$0xff] }
  0x3d   : > { %2156 = vmatmul.mubr.msk.f32.gmra.mxu0 %vm453_vm1, %v342_v46  ;;  %2252 = vmatmul.mubr.msk.f32.gmra.mxu1 %vm453_vm1, %v406_v47  ;;  %v374_v46 = vld [vmem:[%s2534_s17 + $0xa8] sm:$0xff] }
  0x3e   : > { %2158 = vmatprep.mubr.msk.f32.mxu0 %vm453_vm1, %v343_v48  ;;  %2254 = vmatprep.mubr.msk.f32.mxu1 %vm453_vm1, %v407_v49  ;;  %v438_v47 = vld [vmem:[%s2540_s20 + $0xa8] sm:$0xff]  ;;  %v375_v48 = vld [vmem:[%s2534_s17 + $0xb0] sm:$0xff] }
  0x3f   : > { %v439_v49 = vld [vmem:[%s2540_s20 + $0xb0] sm:$0xff] }
  0x41   : > { %2159 = vmatmul.mubr.msk.f32.gmra.mxu0 %vm453_vm1, %v344_v50  ;;  %2255 = vmatmul.mubr.msk.f32.gmra.mxu1 %vm453_vm1, %v408_v51  ;;  %v376_v50 = vld [vmem:[%s2534_s17 + $0xb8] sm:$0xff] }
  0x42   : > { %2161 = vmatprep.mubr.msk.f32.mxu0 %vm453_vm1, %v345_v52  ;;  %2257 = vmatprep.mubr.msk.f32.mxu1 %vm453_vm1, %v409_v53  ;;  %v440_v51 = vld [vmem:[%s2540_s20 + $0xb8] sm:$0xff]  ;;  %v377_v52 = vld [vmem:[%s2534_s17 + $0xc0] sm:$0xff] }
  0x43   : > { %v441_v53 = vld [vmem:[%s2540_s20 + $0xc0] sm:$0xff] }
  0x45   : > { %2162 = vmatmul.mubr.msk.f32.gmra.mxu0 %vm453_vm1, %v346_v54  ;;  %2258 = vmatmul.mubr.msk.f32.gmra.mxu1 %vm453_vm1, %v410_v55  ;;  %v378_v54 = vld [vmem:[%s2534_s17 + $0xc8] sm:$0xff] }
  0x46   : > { %2164 = vmatprep.mubr.msk.f32.mxu0 %vm453_vm1, %v347_v56  ;;  %2260 = vmatprep.mubr.msk.f32.mxu1 %vm453_vm1, %v411_v57  ;;  %v442_v55 = vld [vmem:[%s2540_s20 + $0xc8] sm:$0xff]  ;;  %v379_v56 = vld [vmem:[%s2534_s17 + $0xd0] sm:$0xff] }
  0x47   : > { %v443_v57 = vld [vmem:[%s2540_s20 + $0xd0] sm:$0xff] }
  0x49   : > { %2165 = vmatmul.mubr.msk.f32.gmra.mxu0 %vm453_vm1, %v348_v58  ;;  %2261 = vmatmul.mubr.msk.f32.gmra.mxu1 %vm453_vm1, %v412_v59  ;;  %v380_v58 = vld [vmem:[%s2534_s17 + $0xd8] sm:$0xff] }
  0x4a   : > { %2167 = vmatprep.mubr.msk.f32.mxu0 %vm453_vm1, %v349_v60  ;;  %2263 = vmatprep.mubr.msk.f32.mxu1 %vm453_vm1, %v413_v61  ;;  %v444_v59 = vld [vmem:[%s2540_s20 + $0xd8] sm:$0xff]  ;;  %v381_v60 = vld [vmem:[%s2534_s17 + $0xe0] sm:$0xff] }
  0x4b   : > { %v445_v61 = vld [vmem:[%s2540_s20 + $0xe0] sm:$0xff] }
  0x4d   : > { %2168 = vmatmul.mubr.msk.f32.gmra.mxu0 %vm453_vm1, %v350_v62  ;;  %2264 = vmatmul.mubr.msk.f32.gmra.mxu1 %vm453_vm1, %v414_v63  ;;  %v382_v62 = vld [vmem:[%s2534_s17 + $0xe8] sm:$0xff] }
  0x4e   : > { %2170 = vmatprep.mubr.msk.f32.mxu0 %vm453_vm1, %v351_v0  ;;  %2266 = vmatprep.mubr.msk.f32.mxu1 %vm453_vm1, %v415_v1  ;;  %v446_v63 = vld [vmem:[%s2540_s20 + $0xe8] sm:$0xff]  ;;  %v383_v0 = vld [vmem:[%s2534_s17 + $0xf0] sm:$0xff] }
  0x4f   : > { %v447_v1 = vld [vmem:[%s2540_s20 + $0xf0] sm:$0xff] }
  0x51   : > { %2171 = vmatmul.mubr.msk.f32.gmra.mxu0 %vm453_vm1, %v352_v2  ;;  %2267 = vmatmul.mubr.msk.f32.gmra.mxu1 %vm453_vm1, %v416_v3  ;;  %v384_v2 = vld [vmem:[%s2534_s17 + $0xf8] sm:$0xff] }
  0x52   : > { %2173 = vmatprep.mubr.msk.f32.mxu0 %vm453_vm1, %v353_v4  ;;  %2269 = vmatprep.mubr.msk.f32.mxu1 %vm453_vm1, %v417_v5  ;;  %v448_v3 = vld [vmem:[%s2540_s20 + $0xf8] sm:$0xff] }
  0x55   : > { %2174 = vmatmul.mubr.msk.f32.gmra.mxu0 %vm453_vm1, %v354_v6  ;;  %2270 = vmatmul.mubr.msk.f32.gmra.mxu1 %vm453_vm1, %v418_v7 }
  0x56   : > { %2176 = vmatprep.mubr.msk.f32.mxu0 %vm453_vm1, %v355_v8  ;;  %2272 = vmatprep.mubr.msk.f32.mxu1 %vm453_vm1, %v419_v9 }
  0x59   : > { %2177 = vmatmul.mubr.msk.f32.gmra.mxu0 %vm453_vm1, %v356_v10  ;;  %2273 = vmatmul.mubr.msk.f32.gmra.mxu1 %vm453_vm1, %v420_v11 }
  0x5a   : > { %2179 = vmatprep.mubr.msk.f32.mxu0 %vm453_vm1, %v357_v12  ;;  %2275 = vmatprep.mubr.msk.f32.mxu1 %vm453_vm1, %v421_v13 }
  0x5d   : > { %2180 = vmatmul.mubr.msk.f32.gmra.mxu0 %vm453_vm1, %v358_v14  ;;  %2276 = vmatmul.mubr.msk.f32.gmra.mxu1 %vm453_vm1, %v422_v15 }
  0x5e   : > { %2182 = vmatprep.mubr.msk.f32.mxu0 %vm453_vm1, %v359_v16  ;;  %2278 = vmatprep.mubr.msk.f32.mxu1 %vm453_vm1, %v423_v17 }
  0x61   : > { %2183 = vmatmul.mubr.msk.f32.gmra.mxu0 %vm453_vm1, %v360_v18  ;;  %2279 = vmatmul.mubr.msk.f32.gmra.mxu1 %vm453_vm1, %v424_v19 }
  0x62   : > { %2185 = vmatprep.mubr.msk.f32.mxu0 %vm453_vm1, %v361_v20  ;;  %2281 = vmatprep.mubr.msk.f32.mxu1 %vm453_vm1, %v425_v21 }
  0x65   : > { %2186 = vmatmul.mubr.msk.f32.gmra.mxu0 %vm453_vm1, %v362_v22  ;;  %2282 = vmatmul.mubr.msk.f32.gmra.mxu1 %vm453_vm1, %v426_v23 }
  0x66   : > { %2188 = vmatprep.mubr.msk.f32.mxu0 %vm453_vm1, %v363_v24  ;;  %2284 = vmatprep.mubr.msk.f32.mxu1 %vm453_vm1, %v427_v25 }
  0x69   : > { %2189 = vmatmul.mubr.msk.f32.gmra.mxu0 %vm453_vm1, %v364_v26  ;;  %2285 = vmatmul.mubr.msk.f32.gmra.mxu1 %vm453_vm1, %v428_v27 }
  0x6a   : > { %2191 = vmatprep.mubr.msk.f32.mxu0 %vm453_vm1, %v365_v28  ;;  %2287 = vmatprep.mubr.msk.f32.mxu1 %vm453_vm1, %v429_v29 }
  0x6d   : > { %2192 = vmatmul.mubr.msk.f32.gmra.mxu0 %vm453_vm1, %v366_v30  ;;  %2288 = vmatmul.mubr.msk.f32.gmra.mxu1 %vm453_vm1, %v430_v31 }
  0x6e   : > { %2194 = vmatprep.mubr.msk.f32.mxu0 %vm453_vm1, %v367_v32  ;;  %2290 = vmatprep.mubr.msk.f32.mxu1 %vm453_vm1, %v431_v33 }
  0x71   : > { %2195 = vmatmul.mubr.msk.f32.gmra.mxu0 %vm453_vm1, %v368_v34  ;;  %2291 = vmatmul.mubr.msk.f32.gmra.mxu1 %vm453_vm1, %v432_v35 }
  0x72   : > { %2197 = vmatprep.mubr.msk.f32.mxu0 %vm453_vm1, %v369_v36  ;;  %2293 = vmatprep.mubr.msk.f32.mxu1 %vm453_vm1, %v433_v37 }
  0x75   : > { %2198 = vmatmul.mubr.msk.f32.gmra.mxu0 %vm453_vm1, %v370_v38  ;;  %2294 = vmatmul.mubr.msk.f32.gmra.mxu1 %vm453_vm1, %v434_v39 }
  0x76   : > { %2200 = vmatprep.mubr.msk.f32.mxu0 %vm453_vm1, %v371_v40  ;;  %2296 = vmatprep.mubr.msk.f32.mxu1 %vm453_vm1, %v435_v41 }
  0x79   : > { %2201 = vmatmul.mubr.msk.f32.gmra.mxu0 %vm453_vm1, %v372_v42  ;;  %2297 = vmatmul.mubr.msk.f32.gmra.mxu1 %vm453_vm1, %v436_v43 }
  0x7a   : > { %2203 = vmatprep.mubr.msk.f32.mxu0 %vm453_vm1, %v373_v44  ;;  %2299 = vmatprep.mubr.msk.f32.mxu1 %vm453_vm1, %v437_v45 }
  0x7d   : > { %2204 = vmatmul.mubr.msk.f32.gmra.mxu0 %vm453_vm1, %v374_v46  ;;  %2300 = vmatmul.mubr.msk.f32.gmra.mxu1 %vm453_vm1, %v438_v47 }
  0x7e   : > { %2206 = vmatprep.mubr.msk.f32.mxu0 %vm453_vm1, %v375_v48  ;;  %2302 = vmatprep.mubr.msk.f32.mxu1 %vm453_vm1, %v439_v49 }
  0x81   : > { %2207 = vmatmul.mubr.msk.f32.gmra.mxu0 %vm453_vm1, %v376_v50  ;;  %2303 = vmatmul.mubr.msk.f32.gmra.mxu1 %vm453_vm1, %v440_v51 }
  0x82   : > { %2209 = vmatprep.mubr.msk.f32.mxu0 %vm453_vm1, %v377_v52  ;;  %2305 = vmatprep.mubr.msk.f32.mxu1 %vm453_vm1, %v441_v53 }
  0x85   : > { %2210 = vmatmul.mubr.msk.f32.gmra.mxu0 %vm453_vm1, %v378_v54  ;;  %2306 = vmatmul.mubr.msk.f32.gmra.mxu1 %vm453_vm1, %v442_v55 }
  0x86   : > { %2212 = vmatprep.mubr.msk.f32.mxu0 %vm453_vm1, %v379_v56  ;;  %2308 = vmatprep.mubr.msk.f32.mxu1 %vm453_vm1, %v443_v57 }
  0x89   : > { %2213 = vmatmul.mubr.msk.f32.gmra.mxu0 %vm453_vm1, %v380_v58  ;;  %2309 = vmatmul.mubr.msk.f32.gmra.mxu1 %vm453_vm1, %v444_v59 }
  0x8a   : > { %2215 = vmatprep.mubr.msk.f32.mxu0 %vm453_vm1, %v381_v60  ;;  %2311 = vmatprep.mubr.msk.f32.mxu1 %vm453_vm1, %v445_v61 }
  0x8d   : > { %2216 = vmatmul.mubr.msk.f32.gmra.mxu0 %vm453_vm1, %v382_v62  ;;  %2312 = vmatmul.mubr.msk.f32.gmra.mxu1 %vm453_vm1, %v446_v63 }
  0x8e   : > { %2218 = vmatprep.mubr.msk.f32.mxu0 %vm453_vm1, %v383_v0  ;;  %2314 = vmatprep.mubr.msk.f32.mxu1 %vm453_vm1, %v447_v1 }
  0x91   : > { %2219 = vmatmul.mubr.msk.f32.gmra.mxu0 %vm453_vm1, %v384_v2  ;;  %2315 = vmatmul.mubr.msk.f32.gmra.mxu1 %vm453_vm1, %v448_v3 }
  0xd5   : > { %v2678_v4 = vpop.f32.mrf.mxu0  ;;  %v2680_v5 = vpop.f32.mrf.mxu1 }
  0xd7   : > { %v2682_v6 = vpop.f32.mrf.mxu0  ;;  %v2684_v7 = vpop.f32.mrf.mxu1 }
  0xd9   : > { %v2686_v8 = vpop.f32.mrf.mxu0  ;;  %v2688_v9 = vpop.f32.mrf.mxu1 }
  0xdb   : > { %v2690_v10 = vpop.f32.mrf.mxu0  ;;  %v2692_v11 = vpop.f32.mrf.mxu1 }
  0xdd   : > { %v2694_v12 = vpop.f32.mrf.mxu0  ;;  %v2696_v13 = vpop.f32.mrf.mxu1 }
  0xdf   : > { %v2698_v14 = vpop.f32.mrf.mxu0  ;;  %v2700_v15 = vpop.f32.mrf.mxu1 }
  0xe1   : > { %v2702_v16 = vpop.f32.mrf.mxu0  ;;  %v2704_v17 = vpop.f32.mrf.mxu1 }
  0xe3   : > { %v2706_v18 = vpop.f32.mrf.mxu0  ;;  %v2708_v19 = vpop.f32.mrf.mxu1 }
  0xe5   : > { %v2710_v20 = vpop.f32.mrf.mxu0  ;;  %v2712_v21 = vpop.f32.mrf.mxu1 }
  0xe7   : > { %v2714_v22 = vpop.f32.mrf.mxu0  ;;  %v2716_v23 = vpop.f32.mrf.mxu1 }
  0xe9   : > { %v2718_v24 = vpop.f32.mrf.mxu0  ;;  %v2720_v25 = vpop.f32.mrf.mxu1 }
  0xeb   : > { %v2722_v26 = vpop.f32.mrf.mxu0  ;;  %v2724_v27 = vpop.f32.mrf.mxu1 }
  0xed   : > { %v2726_v28 = vpop.f32.mrf.mxu0  ;;  %v2728_v29 = vpop.f32.mrf.mxu1 }
  0xef   : > { %v2730_v30 = vpop.f32.mrf.mxu0  ;;  %v2732_v31 = vpop.f32.mrf.mxu1 }
  0xf1   : > { %v2734_v32 = vpop.f32.mrf.mxu0  ;;  %v2736_v33 = vpop.f32.mrf.mxu1 }
  0xf3   : > { %v2738_v34 = vpop.f32.mrf.mxu0  ;;  %v2740_v35 = vpop.f32.mrf.mxu1 }
  0xf5   : > { %v2742_v36 = vpop.f32.mrf.mxu0  ;;  %v2744_v37 = vpop.f32.mrf.mxu1 }
  0xf7   : > { %v2746_v38 = vpop.f32.mrf.mxu0  ;;  %v2748_v39 = vpop.f32.mrf.mxu1 }
  0xf9   : > { %v2750_v40 = vpop.f32.mrf.mxu0  ;;  %v2752_v41 = vpop.f32.mrf.mxu1 }
  0xfb   : > { %v2754_v42 = vpop.f32.mrf.mxu0  ;;  %v2756_v43 = vpop.f32.mrf.mxu1 }
  0xfd   : > { %v2758_v44 = vpop.f32.mrf.mxu0  ;;  %v2760_v45 = vpop.f32.mrf.mxu1 }
  0xff   : > { %v2762_v46 = vpop.f32.mrf.mxu0  ;;  %v2764_v47 = vpop.f32.mrf.mxu1 }
 0x101   : > { %v2766_v48 = vpop.f32.mrf.mxu0  ;;  %v2768_v49 = vpop.f32.mrf.mxu1 }
 0x103   : > { %v2770_v50 = vpop.f32.mrf.mxu0  ;;  %v2772_v51 = vpop.f32.mrf.mxu1 }
 0x105   : > { %v2774_v52 = vpop.f32.mrf.mxu0  ;;  %v2776_v53 = vpop.f32.mrf.mxu1 }
 0x107   : > { %v2778_v54 = vpop.f32.mrf.mxu0  ;;  %v2780_v55 = vpop.f32.mrf.mxu1 }
 0x108   : > { %2955 = vst [vmem:[#allocation2_spill] sm:$0xff] %v2778_v54  ;;  %2956 = vst [vmem:[#allocation3_spill] sm:$0xff] %v2780_v55 }
 0x109   : > { %v2782_v56 = vpop.f32.mrf.mxu0  ;;  %v2784_v57 = vpop.f32.mrf.mxu1 }
 0x10a   : > { %2957 = vst [vmem:[#allocation4_spill] sm:$0xff] %v2782_v56  ;;  %2958 = vst [vmem:[#allocation5_spill] sm:$0xff] %v2784_v57 }
 0x10b   : > { %v2786_v58 = vpop.f32.mrf.mxu0  ;;  %v2788_v59 = vpop.f32.mrf.mxu1 }
 0x10c   : > { %2959 = vst [vmem:[#allocation6_spill] sm:$0xff] %v2786_v58  ;;  %2960 = vst [vmem:[#allocation7_spill] sm:$0xff] %v2788_v59 }
 0x10d   : > { %v2790_v60 = vpop.f32.mrf.mxu0  ;;  %v2792_v61 = vpop.f32.mrf.mxu1 }
 0x10e   : > { %2961 = vst [vmem:[#allocation8_spill] sm:$0xff] %v2790_v60  ;;  %2962 = vst [vmem:[#allocation9_spill] sm:$0xff] %v2792_v61 }
 0x10f   : > { %v2794_v62 = vpop.f32.mrf.mxu0  ;;  %v2796_v63 = vpop.f32.mrf.mxu1 }
 0x110   : > { %2963 = vst [vmem:[#allocation10_spill] sm:$0xff] %v2794_v62  ;;  %2964 = vst [vmem:[#allocation11_spill] sm:$0xff] %v2796_v63  ;;  %v2811_v62 = vld [vmem:[%s2953_s5] ss:$0 sm:$0xff] }
 0x111   : > { %v2798_v0 = vpop.f32.mrf.mxu0  ;;  %v2800_v1 = vpop.f32.mrf.mxu1 }
 0x112   : > { %2965 = vst [vmem:[#allocation12_spill] sm:$0xff] %v2798_v0  ;;  %2966 = vst [vmem:[#allocation13_spill] sm:$0xff] %v2800_v1 }
 0x113   : > { %v2802_v2 = vpop.f32.mrf.mxu0  ;;  %v2804_v3 = vpop.f32.mrf.mxu1 }
 0x114   : > { %2967 = vst [vmem:[#allocation14_spill] sm:$0xff] %v2802_v2  ;;  %2968 = vst [vmem:[#allocation15_spill] sm:$0xff] %v2804_v3 }
 0x115   : > { %v2175_v57 = vpop.f32.mrf.mxu0  ;;  %v2271_v58 = vpop.f32.mrf.mxu1 }
 0x116   : > { %v1548_v59 = vmax.f32 %v2678_v4, %v2175_v57  ;;  %v1580_v60 = vmax.f32 %v2680_v5, %v2271_v58 }
 0x117   : > { %v1068_v63 = vpop.f32.mrf.mxu0  ;;  %v1388_v0 = vpop.f32.mrf.mxu1 }
 0x118   : > { %v1612_v61 = vmax.f32 %v1548_v59, %v1580_v60  ;;  %v1547_v1 = vmax.f32 %v2682_v6, %v1068_v63  ;;  %v1579_v2 = vmax.f32 %v2684_v7, %v1388_v0 }
 0x119   : > { %v2178_v3 = vpop.f32.mrf.mxu0  ;;  %v2274_v56 = vpop.f32.mrf.mxu1 }
 0x11a   : > { %v1651_v55 = vadd.f32 %v2811_v62, %v1612_v61  ;;  %v1611_v54 = vmax.f32 %v1547_v1, %v1579_v2  ;;  %v1550_v4 = vmax.f32 %v2686_v8, %v2178_v3  ;;  %v1582_v5 = vmax.f32 %v2688_v9, %v2274_v56 }
 0x11b   : > { %v1078_v57 = vpop.f32.mrf.mxu0  ;;  %v1398_v58 = vpop.f32.mrf.mxu1 }
 0x11c   : > { %v1683_v6 = vmax.f32 %v1651_v55, 0.0  ;;  %v1650_v7 = vadd.f32 %v2811_v62, %v1611_v54  ;;  %v1614_v59 = vmax.f32 %v1550_v4, %v1582_v5  ;;  %v1549_v60 = vmax.f32 %v2690_v10, %v1078_v57 }
 0x11d   : > { %v1581_v61 = vmax.f32 %v2692_v11, %v1398_v58  ;;  %v2181_v8 = vpop.f32.mrf.mxu0  ;;  %v2277_v63 = vpop.f32.mrf.mxu1 }
 0x11e   : > { %1715 = vst [vmem:[%s2822_s26 + $0x8] sm:$0xff] %v1683_v6  ;;  %v1682_v9 = vmax.f32 %v1650_v7, 0.0  ;;  %v1653_v56 = vadd.f32 %v2811_v62, %v1614_v59  ;;  %v1552_v0 = vmax.f32 %v2694_v12, %v2181_v8  ;;  %v1584_v1 = vmax.f32 %v2696_v13, %v2277_v63 }
 0x11f   : > { %v1613_v2 = vmax.f32 %v1549_v60, %v1581_v61  ;;  %v1088_v55 = vpop.f32.mrf.mxu0  ;;  %v1408_v3 = vpop.f32.mrf.mxu1 }
 0x120   : > { %1714 = vst [vmem:[%s2822_s26] sm:$0xff] %v1682_v9  ;;  %v1685_v54 = vmax.f32 %v1653_v56, 0.0  ;;  %v1616_v4 = vmax.f32 %v1552_v0, %v1584_v1  ;;  %v1551_v10 = vmax.f32 %v2698_v14, %v1088_v55  ;;  %v1583_v11 = vmax.f32 %v2700_v15, %v1408_v3 }
 0x121   : > { %v1652_v5 = vadd.f32 %v2811_v62, %v1613_v2  ;;  %v2184_v57 = vpop.f32.mrf.mxu0  ;;  %v2280_v58 = vpop.f32.mrf.mxu1 }
 0x122   : > { %1717 = vst [vmem:[%s2822_s26 + $0x18] sm:$0xff] %v1685_v54  ;;  %v1655_v12 = vadd.f32 %v2811_v62, %v1616_v4  ;;  %v1615_v13 = vmax.f32 %v1551_v10, %v1583_v11  ;;  %v1554_v6 = vmax.f32 %v2702_v16, %v2184_v57  ;;  %v1586_v7 = vmax.f32 %v2704_v17, %v2280_v58 }
 0x123   : > { %v1684_v59 = vmax.f32 %v1652_v5, 0.0  ;;  %v1098_v60 = vpop.f32.mrf.mxu0  ;;  %v1418_v61 = vpop.f32.mrf.mxu1 }
 0x124   : > { %v1687_v14 = vmax.f32 %v1655_v12, 0.0  ;;  %v1654_v15 = vadd.f32 %v2811_v62, %v1615_v13  ;;  %v1618_v8 = vmax.f32 %v1554_v6, %v1586_v7  ;;  %v1553_v63 = vmax.f32 %v2706_v18, %v1098_v60 }
 0x125   : > { %1716 = vst [vmem:[%s2822_s26 + $0x10] sm:$0xff] %v1684_v59  ;;  %v1585_v9 = vmax.f32 %v2708_v19, %v1418_v61  ;;  %v2187_v56 = vpop.f32.mrf.mxu0  ;;  %v2283_v0 = vpop.f32.mrf.mxu1 }
 0x126   : > { %1719 = vst [vmem:[%s2822_s26 + $0x28] sm:$0xff] %v1687_v14  ;;  %v1686_v16 = vmax.f32 %v1654_v15, 0.0  ;;  %v1657_v17 = vadd.f32 %v2811_v62, %v1618_v8  ;;  %v1556_v1 = vmax.f32 %v2710_v20, %v2187_v56  ;;  %v1588_v2 = vmax.f32 %v2712_v21, %v2283_v0 }
 0x127   : > { %v1617_v55 = vmax.f32 %v1553_v63, %v1585_v9  ;;  %v1108_v3 = vpop.f32.mrf.mxu0  ;;  %v1428_v54 = vpop.f32.mrf.mxu1 }
 0x128   : > { %1718 = vst [vmem:[%s2822_s26 + $0x20] sm:$0xff] %v1686_v16  ;;  %v1689_v4 = vmax.f32 %v1657_v17, 0.0  ;;  %v1620_v18 = vmax.f32 %v1556_v1, %v1588_v2  ;;  %v1555_v10 = vmax.f32 %v2714_v22, %v1108_v3  ;;  %v1587_v19 = vmax.f32 %v2716_v23, %v1428_v54 }
 0x129   : > { %v1656_v11 = vadd.f32 %v2811_v62, %v1617_v55  ;;  %v2190_v5 = vpop.f32.mrf.mxu0  ;;  %v2286_v57 = vpop.f32.mrf.mxu1 }
 0x12a   : > { %1721 = vst [vmem:[%s2822_s26 + $0x38] sm:$0xff] %v1689_v4  ;;  %v1659_v20 = vadd.f32 %v2811_v62, %v1620_v18  ;;  %v1619_v21 = vmax.f32 %v1555_v10, %v1587_v19  ;;  %v1558_v58 = vmax.f32 %v2718_v24, %v2190_v5  ;;  %v1590_v12 = vmax.f32 %v2720_v25, %v2286_v57 }
 0x12b   : > { %v1688_v13 = vmax.f32 %v1656_v11, 0.0  ;;  %v1118_v6 = vpop.f32.mrf.mxu0  ;;  %v1438_v7 = vpop.f32.mrf.mxu1 }
 0x12c   : > { %v1691_v22 = vmax.f32 %v1659_v20, 0.0  ;;  %v1658_v23 = vadd.f32 %v2811_v62, %v1619_v21  ;;  %v1622_v59 = vmax.f32 %v1558_v58, %v1590_v12  ;;  %v1557_v60 = vmax.f32 %v2722_v26, %v1118_v6 }
 0x12d   : > { %1720 = vst [vmem:[%s2822_s26 + $0x30] sm:$0xff] %v1688_v13  ;;  %v1589_v61 = vmax.f32 %v2724_v27, %v1438_v7  ;;  %v2193_v14 = vpop.f32.mrf.mxu0  ;;  %v2289_v15 = vpop.f32.mrf.mxu1 }
 0x12e   : > { %1723 = vst [vmem:[%s2822_s26 + $0x48] sm:$0xff] %v1691_v22  ;;  %v1690_v24 = vmax.f32 %v1658_v23, 0.0  ;;  %v1661_v25 = vadd.f32 %v2811_v62, %v1622_v59  ;;  %v1560_v8 = vmax.f32 %v2726_v28, %v2193_v14  ;;  %v1592_v63 = vmax.f32 %v2728_v29, %v2289_v15 }
 0x12f   : > { %v1621_v9 = vmax.f32 %v1557_v60, %v1589_v61  ;;  %v1128_v56 = vpop.f32.mrf.mxu0  ;;  %v1448_v0 = vpop.f32.mrf.mxu1 }
 0x130   : > { %1722 = vst [vmem:[%s2822_s26 + $0x40] sm:$0xff] %v1690_v24  ;;  %v1693_v16 = vmax.f32 %v1661_v25, 0.0  ;;  %v1624_v26 = vmax.f32 %v1560_v8, %v1592_v63  ;;  %v1559_v17 = vmax.f32 %v2730_v30, %v1128_v56  ;;  %v1591_v27 = vmax.f32 %v2732_v31, %v1448_v0 }
 0x131   : > { %v1660_v1 = vadd.f32 %v2811_v62, %v1621_v9  ;;  %v2196_v2 = vpop.f32.mrf.mxu0  ;;  %v2292_v55 = vpop.f32.mrf.mxu1 }
 0x132   : > { %1725 = vst [vmem:[%s2822_s26 + $0x58] sm:$0xff] %v1693_v16  ;;  %v1663_v28 = vadd.f32 %v2811_v62, %v1624_v26  ;;  %v1623_v29 = vmax.f32 %v1559_v17, %v1591_v27  ;;  %v1562_v3 = vmax.f32 %v2734_v32, %v2196_v2  ;;  %v1594_v54 = vmax.f32 %v2736_v33, %v2292_v55 }
 0x133   : > { %v1692_v4 = vmax.f32 %v1660_v1, 0.0  ;;  %v1138_v18 = vpop.f32.mrf.mxu0  ;;  %v1458_v10 = vpop.f32.mrf.mxu1 }
 0x134   : > { %v1695_v30 = vmax.f32 %v1663_v28, 0.0  ;;  %v1662_v31 = vadd.f32 %v2811_v62, %v1623_v29  ;;  %v1626_v19 = vmax.f32 %v1562_v3, %v1594_v54  ;;  %v1561_v11 = vmax.f32 %v2738_v34, %v1138_v18 }
 0x135   : > { %1724 = vst [vmem:[%s2822_s26 + $0x50] sm:$0xff] %v1692_v4  ;;  %v1593_v5 = vmax.f32 %v2740_v35, %v1458_v10  ;;  %v2199_v57 = vpop.f32.mrf.mxu0  ;;  %v2295_v20 = vpop.f32.mrf.mxu1 }
 0x136   : > { %1727 = vst [vmem:[%s2822_s26 + $0x68] sm:$0xff] %v1695_v30  ;;  %v1694_v32 = vmax.f32 %v1662_v31, 0.0  ;;  %v1665_v33 = vadd.f32 %v2811_v62, %v1626_v19  ;;  %v1564_v21 = vmax.f32 %v2742_v36, %v2199_v57  ;;  %v1596_v58 = vmax.f32 %v2744_v37, %v2295_v20 }
 0x137   : > { %v1625_v12 = vmax.f32 %v1561_v11, %v1593_v5  ;;  %v1148_v13 = vpop.f32.mrf.mxu0  ;;  %v1468_v6 = vpop.f32.mrf.mxu1 }
 0x138   : > { %1726 = vst [vmem:[%s2822_s26 + $0x60] sm:$0xff] %v1694_v32  ;;  %v1697_v7 = vmax.f32 %v1665_v33, 0.0  ;;  %v1628_v34 = vmax.f32 %v1564_v21, %v1596_v58  ;;  %v1563_v22 = vmax.f32 %v2746_v38, %v1148_v13  ;;  %v1595_v35 = vmax.f32 %v2748_v39, %v1468_v6  ;;  %v2969_v13 = vld [vmem:[#allocation2_spill] sm:$0xff] }
 0x139   : > { %v1664_v23 = vadd.f32 %v2811_v62, %v1625_v12  ;;  %v2202_v59 = vpop.f32.mrf.mxu0  ;;  %v2298_v60 = vpop.f32.mrf.mxu1 }
 0x13a   : > { %1729 = vst [vmem:[%s2822_s26 + $0x78] sm:$0xff] %v1697_v7  ;;  %v1667_v36 = vadd.f32 %v2811_v62, %v1628_v34  ;;  %v1627_v37 = vmax.f32 %v1563_v22, %v1595_v35  ;;  %v1566_v61 = vmax.f32 %v2750_v40, %v2202_v59  ;;  %v1598_v14 = vmax.f32 %v2752_v41, %v2298_v60  ;;  %v2972_v60 = vld [vmem:[#allocation5_spill] sm:$0xff] }
 0x13b   : > { %v1696_v15 = vmax.f32 %v1664_v23, 0.0  ;;  %v1158_v24 = vpop.f32.mrf.mxu0  ;;  %v1478_v25 = vpop.f32.mrf.mxu1  ;;  %v2971_v23 = vld [vmem:[#allocation4_spill] sm:$0xff] }
 0x13c   : > { %v1699_v38 = vmax.f32 %v1667_v36, 0.0  ;;  %v1666_v39 = vadd.f32 %v2811_v62, %v1627_v37  ;;  %v1630_v8 = vmax.f32 %v1566_v61, %v1598_v14  ;;  %v1565_v63 = vmax.f32 %v2754_v42, %v1158_v24 }
 0x13d   : > { %1728 = vst [vmem:[%s2822_s26 + $0x70] sm:$0xff] %v1696_v15  ;;  %v1597_v9 = vmax.f32 %v2756_v43, %v1478_v25  ;;  %v2205_v56 = vpop.f32.mrf.mxu0  ;;  %v2301_v0 = vpop.f32.mrf.mxu1 }
 0x13e   : > { %1731 = vst [vmem:[%s2822_s26 + $0x88] sm:$0xff] %v1699_v38  ;;  %v1698_v40 = vmax.f32 %v1666_v39, 0.0  ;;  %v1669_v41 = vadd.f32 %v2811_v62, %v1630_v8  ;;  %v1568_v16 = vmax.f32 %v2758_v44, %v2205_v56  ;;  %v1600_v26 = vmax.f32 %v2760_v45, %v2301_v0  ;;  %v2973_v38 = vld [vmem:[#allocation6_spill] sm:$0xff]  ;;  %v2974_v8 = vld [vmem:[#allocation7_spill] sm:$0xff] }
 0x13f   : > { %v1629_v17 = vmax.f32 %v1565_v63, %v1597_v9  ;;  %v1168_v27 = vpop.f32.mrf.mxu0  ;;  %v1488_v1 = vpop.f32.mrf.mxu1 }
 0x140   : > { %1730 = vst [vmem:[%s2822_s26 + $0x80] sm:$0xff] %v1698_v40  ;;  %v1701_v2 = vmax.f32 %v1669_v41, 0.0  ;;  %v1632_v42 = vmax.f32 %v1568_v16, %v1600_v26  ;;  %v1567_v55 = vmax.f32 %v2762_v46, %v1168_v27  ;;  %v1599_v43 = vmax.f32 %v2764_v47, %v1488_v1  ;;  %v2975_v41 = vld [vmem:[#allocation8_spill] sm:$0xff]  ;;  %v2976_v26 = vld [vmem:[#allocation9_spill] sm:$0xff] }
 0x141   : > { %v1668_v28 = vadd.f32 %v2811_v62, %v1629_v17  ;;  %v2208_v29 = vpop.f32.mrf.mxu0  ;;  %v2304_v3 = vpop.f32.mrf.mxu1 }
 0x142   : > { %1733 = vst [vmem:[%s2822_s26 + $0x98] sm:$0xff] %v1701_v2  ;;  %v1671_v44 = vadd.f32 %v2811_v62, %v1632_v42  ;;  %v1631_v45 = vmax.f32 %v1567_v55, %v1599_v43  ;;  %v1570_v54 = vmax.f32 %v2766_v48, %v2208_v29  ;;  %v1602_v4 = vmax.f32 %v2768_v49, %v2304_v3  ;;  %v2977_v43 = vld [vmem:[#allocation10_spill] sm:$0xff]  ;;  %v2978_v29 = vld [vmem:[#allocation11_spill] sm:$0xff] }
 0x143   : > { %v1700_v18 = vmax.f32 %v1668_v28, 0.0  ;;  %v1178_v10 = vpop.f32.mrf.mxu0  ;;  %v1498_v30 = vpop.f32.mrf.mxu1 }
 0x144   : > { %v1703_v46 = vmax.f32 %v1671_v44, 0.0  ;;  %v1670_v47 = vadd.f32 %v2811_v62, %v1631_v45  ;;  %v1634_v31 = vmax.f32 %v1570_v54, %v1602_v4  ;;  %v1569_v19 = vmax.f32 %v2770_v50, %v1178_v10  ;;  %v2979_v10 = vld [vmem:[#allocation12_spill] sm:$0xff] }
 0x145   : > { %1732 = vst [vmem:[%s2822_s26 + $0x90] sm:$0xff] %v1700_v18  ;;  %v1601_v11 = vmax.f32 %v2772_v51, %v1498_v30  ;;  %v2211_v5 = vpop.f32.mrf.mxu0  ;;  %v2307_v57 = vpop.f32.mrf.mxu1  ;;  %v2970_v51 = vld [vmem:[#allocation3_spill] sm:$0xff] }
 0x146   : > { %1735 = vst [vmem:[%s2822_s26 + $0xa8] sm:$0xff] %v1703_v46  ;;  %v1702_v48 = vmax.f32 %v1670_v47, 0.0  ;;  %v1673_v49 = vadd.f32 %v2811_v62, %v1634_v31  ;;  %v1572_v20 = vmax.f32 %v2774_v52, %v2211_v5  ;;  %v1604_v32 = vmax.f32 %v2776_v53, %v2307_v57  ;;  %v2980_v46 = vld [vmem:[#allocation13_spill] sm:$0xff] }
 0x147   : > { %v1633_v33 = vmax.f32 %v1569_v19, %v1601_v11  ;;  %v1188_v21 = vpop.f32.mrf.mxu0  ;;  %v1508_v58 = vpop.f32.mrf.mxu1 }
 0x148   : > { %1734 = vst [vmem:[%s2822_s26 + $0xa0] sm:$0xff] %v1702_v48  ;;  %v1705_v12 = vmax.f32 %v1673_v49, 0.0  ;;  %v1636_v50 = vmax.f32 %v1572_v20, %v1604_v32  ;;  %v1571_v6 = vmax.f32 %v2969_v13, %v1188_v21  ;;  %v1603_v7 = vmax.f32 %v2970_v51, %v1508_v58  ;;  %v2981_v49 = vld [vmem:[#allocation14_spill] sm:$0xff]  ;;  %v2982_v32 = vld [vmem:[#allocation15_spill] sm:$0xff] }
 0x149   : > { %v1672_v34 = vadd.f32 %v2811_v62, %v1633_v33  ;;  %v2214_v22 = vpop.f32.mrf.mxu0  ;;  %v2310_v35 = vpop.f32.mrf.mxu1 }
 0x14a   : > { %1737 = vst [vmem:[%s2822_s26 + $0xb8] sm:$0xff] %v1705_v12  ;;  %v1675_v52 = vadd.f32 %v2811_v62, %v1636_v50  ;;  %v1635_v53 = vmax.f32 %v1571_v6, %v1603_v7  ;;  %v1574_v59 = vmax.f32 %v2971_v23, %v2214_v22  ;;  %v1606_v36 = vmax.f32 %v2972_v60, %v2310_v35 }
 0x14b   : > { %v1704_v37 = vmax.f32 %v1672_v34, 0.0  ;;  %v1198_v61 = vpop.f32.mrf.mxu0  ;;  %v1518_v14 = vpop.f32.mrf.mxu1 }
 0x14c   : > { %v1707_v15 = vmax.f32 %v1675_v52, 0.0  ;;  %v1674_v24 = vadd.f32 %v2811_v62, %v1635_v53  ;;  %v1638_v25 = vmax.f32 %v1574_v59, %v1606_v36  ;;  %v1573_v39 = vmax.f32 %v2973_v38, %v1198_v61 }
 0x14d   : > { %1736 = vst [vmem:[%s2822_s26 + $0xb0] sm:$0xff] %v1704_v37  ;;  %v1605_v63 = vmax.f32 %v2974_v8, %v1518_v14  ;;  %v2217_v9 = vpop.f32.mrf.mxu0  ;;  %v2313_v56 = vpop.f32.mrf.mxu1 }
 0x14e   : > { %1739 = vst [vmem:[%s2822_s26 + $0xc8] sm:$0xff] %v1707_v15  ;;  %v1706_v0 = vmax.f32 %v1674_v24, 0.0  ;;  %v1677_v40 = vadd.f32 %v2811_v62, %v1638_v25  ;;  %v1576_v16 = vmax.f32 %v2975_v41, %v2217_v9  ;;  %v1608_v17 = vmax.f32 %v2976_v26, %v2313_v56 }
 0x14f   : > { %v1637_v27 = vmax.f32 %v1573_v39, %v1605_v63  ;;  %v1208_v1 = vpop.f32.mrf.mxu0  ;;  %v1528_v2 = vpop.f32.mrf.mxu1 }
 0x150   : > { %1738 = vst [vmem:[%s2822_s26 + $0xc0] sm:$0xff] %v1706_v0  ;;  %v1709_v42 = vmax.f32 %v1677_v40, 0.0  ;;  %v1640_v55 = vmax.f32 %v1576_v16, %v1608_v17  ;;  %v1575_v28 = vmax.f32 %v2977_v43, %v1208_v1  ;;  %v1607_v3 = vmax.f32 %v2978_v29, %v1528_v2 }
 0x151   : > { %v1676_v44 = vadd.f32 %v2811_v62, %v1637_v27  ;;  %v2220_v45 = vpop.f32.mrf.mxu0  ;;  %v2316_v54 = vpop.f32.mrf.mxu1 }
 0x152   : > { %1741 = vst [vmem:[%s2822_s26 + $0xd8] sm:$0xff] %v1709_v42  ;;  %v1679_v4 = vadd.f32 %v2811_v62, %v1640_v55  ;;  %v1639_v18 = vmax.f32 %v1575_v28, %v1607_v3  ;;  %v1578_v30 = vmax.f32 %v2979_v10, %v2220_v45  ;;  %v1610_v47 = vmax.f32 %v2980_v46, %v2316_v54 }
 0x153   : > { %v1708_v31 = vmax.f32 %v1676_v44, 0.0  ;;  %v1218_v19 = vpop.f32.mrf.mxu0  ;;  %v1538_v11 = vpop.f32.mrf.mxu1 }
 0x154   : > { %v1711_v5 = vmax.f32 %v1679_v4, 0.0  ;;  %v1678_v57 = vadd.f32 %v2811_v62, %v1639_v18  ;;  %v1642_v48 = vmax.f32 %v1578_v30, %v1610_v47  ;;  %v1577_v20 = vmax.f32 %v2981_v49, %v1218_v19 }
 0x155   : > { %1740 = vst [vmem:[%s2822_s26 + $0xd0] sm:$0xff] %v1708_v31  ;;  %v1609_v33 = vmax.f32 %v2982_v32, %v1538_v11 }
 0x156   : > { %1743 = vst [vmem:[%s2822_s26 + $0xe8] sm:$0xff] %v1711_v5  ;;  %v1710_v21 = vmax.f32 %v1678_v57, 0.0  ;;  %v1681_v58 = vadd.f32 %v2811_v62, %v1642_v48 }
 0x157   : > { %v1641_v12 = vmax.f32 %v1577_v20, %v1609_v33 }
 0x158   : > { %1742 = vst [vmem:[%s2822_s26 + $0xe0] sm:$0xff] %v1710_v21  ;;  %v1713_v50 = vmax.f32 %v1681_v58, 0.0 }
 0x159   : > { %v1680_v13 = vadd.f32 %v2811_v62, %v1641_v12 }
 0x15a   : > { %1745 = vst [vmem:[%s2822_s26 + $0xf8] sm:$0xff] %v1713_v50 }
 0x15b   : > { %v1712_v6 = vmax.f32 %v1680_v13, 0.0 }
 0x15d   : > { %1744 = vst [vmem:[%s2822_s26 + $0xf0] sm:$0xff] %v1712_v6 }
 0x15e PF: > { %s16_s21 = sadd.s32 1, %s2339_s21  }
 0x15f   : > { %p13_p4 = scmp.ge.s32.totalorder %s16_s21, 4  }
 0x161   :  { %15 = sbr.rel (!%p13_p4) target bundleno = 1 (0x1), region = 83 }

// kernel: tutorial_cnn_forward.4
= control target key start
LH: loop header
LB: loop body
LE: loop exit
PB: predicated region body
PF: predicated region fallthrough
CT: control target
= control target key end

     0   :  { %v514_v0 = vmov 0.0   ;;  %vm183_vm0 = vcmask 1045504   ;;  %vm98_vm1 = vcmask 179200   ;;  %s886_s4 = inlined_call_operand.vmem [shape: f32[150,128], index: 4, kind: input, shape index: {}]   ;;  %s887_s0 = inlined_call_operand.vmem [shape: f32[56,150], index: 0, kind: input, shape index: {}]   ;;  %s888_s2 = inlined_call_operand.vmem [shape: f32[56,150], index: 2, kind: input, shape index: {}]   ;;  %s889_s1 = inlined_call_operand.vmem [shape: f32[56,150], index: 1, kind: input, shape index: {}]   ;;  %s890_s3 = inlined_call_operand.vmem [shape: f32[56,150], index: 3, kind: input, shape index: {}]   ;;  %s891_s5 = inlined_call_operand.vmem [shape: f32[1,128], index: 5, kind: input, shape index: {}]   ;;  %s892_s6 = inlined_call_operand.vmem [shape: f32[56,128], index: 6, kind: output, shape index: {}]  }
   0x1   :  { %187 = vmatprep.subr.mxu0 %v514_v0  ;;  %475 = vmatprep.subr.mxu1 %v514_v0  ;;  %v94_v1 = vld [vmem:[%s886_s4 + $0x78] sm:$0xff]  ;;  %v93_v2 = vld [vmem:[%s886_s4 + $0x70] sm:$0xff]  ;;  %v92_v3 = vld [vmem:[%s886_s4 + $0x68] sm:$0xff] }
   0x2   :  { %188 = vmatpush1.msra.mxu0 %v94_v1  ;;  %494 = vmatpush1.msra.mxu1 %v94_v1  ;;  %v91_v4 = vld [vmem:[%s886_s4 + $0x60] sm:$0xff]  ;;  %v90_v5 = vld [vmem:[%s886_s4 + $0x58] sm:$0xff]  ;;  %v89_v6 = vld [vmem:[%s886_s4 + $0x50] sm:$0xff] }
   0x3   :  { %189 = vmatprep.subr.mxu0 %v514_v0  ;;  %476 = vmatprep.subr.mxu1 %v514_v0  ;;  %v88_v7 = vld [vmem:[%s886_s4 + $0x48] sm:$0xff]  ;;  %v87_v8 = vld [vmem:[%s886_s4 + $0x40] sm:$0xff]  ;;  %v86_v9 = vld [vmem:[%s886_s4 + $0x38] sm:$0xff] }
   0x4   :  { %190 = vmatpush1.msra.mxu0 %v93_v2  ;;  %495 = vmatpush1.msra.mxu1 %v93_v2  ;;  %v85_v10 = vld [vmem:[%s886_s4 + $0x30] sm:$0xff]  ;;  %v84_v11 = vld [vmem:[%s886_s4 + $0x28] sm:$0xff]  ;;  %v83_v12 = vld [vmem:[%s886_s4 + $0x20] sm:$0xff] }
   0x5   :  { %191 = vmatprep.subr.mxu0 %v514_v0  ;;  %477 = vmatprep.subr.mxu1 %v514_v0  ;;  %v82_v13 = vld [vmem:[%s886_s4 + $0x18] sm:$0xff]  ;;  %v81_v14 = vld [vmem:[%s886_s4 + $0x10] sm:$0xff]  ;;  %v80_v15 = vld [vmem:[%s886_s4 + $0x8] sm:$0xff] }
   0x6   :  { %192 = vmatpush1.msra.mxu0 %v92_v3  ;;  %496 = vmatpush1.msra.mxu1 %v92_v3  ;;  %v79_v16 = vld [vmem:[%s886_s4] sm:$0xff]  ;;  %v97_v17 = vld [vmem:[%s886_s4 + $0x90] sm:$0x3f]  ;;  %v96_v18 = vld [vmem:[%s886_s4 + $0x88] sm:$0xff] }
   0x7   :  { %193 = vmatprep.subr.mxu0 %v514_v0  ;;  %478 = vmatprep.subr.mxu1 %v514_v0  ;;  %v95_v19 = vld [vmem:[%s886_s4 + $0x80] sm:$0xff]  ;;  %v24_v20 = vld [vmem:[%s887_s0 + $0x8] sm:$0xff]  ;;  %v26_v24 = vld [vmem:[%s887_s0 + $0x18] sm:$0xff] }
   0x8   :  { %194 = vmatpush1.msra.mxu0 %v91_v4  ;;  %497 = vmatpush1.msra.mxu1 %v91_v4  ;;  %v52_v21 = vld [vmem:[%s888_s2 + $0x8] sm:$0xff]  ;;  %v23_v22 = vld [vmem:[%s887_s0] sm:$0xff]  ;;  %v54_v25 = vld [vmem:[%s888_s2 + $0x18] sm:$0xff] }
   0x9   :  { %195 = vmatprep.subr.mxu0 %v514_v0  ;;  %479 = vmatprep.subr.mxu1 %v514_v0  ;;  %v51_v23 = vld [vmem:[%s888_s2] sm:$0xff]  ;;  %v25_v26 = vld [vmem:[%s887_s0 + $0x10] sm:$0xff]  ;;  %v28_v28 = vld [vmem:[%s887_s0 + $0x28] sm:$0xff] }
   0xa   :  { %196 = vmatpush1.msra.mxu0 %v90_v5  ;;  %498 = vmatpush1.msra.mxu1 %v90_v5  ;;  %v53_v27 = vld [vmem:[%s888_s2 + $0x10] sm:$0xff]  ;;  %v56_v29 = vld [vmem:[%s888_s2 + $0x28] sm:$0xff]  ;;  %v27_v30 = vld [vmem:[%s887_s0 + $0x20] sm:$0xff] }
   0xb   :  { %197 = vmatprep.subr.mxu0 %v514_v0  ;;  %480 = vmatprep.subr.mxu1 %v514_v0  ;;  %v55_v31 = vld [vmem:[%s888_s2 + $0x20] sm:$0xff]  ;;  %v30_v32 = vld [vmem:[%s887_s0 + $0x38] sm:$0xff]  ;;  %v29_v34 = vld [vmem:[%s887_s0 + $0x30] sm:$0xff] }
   0xc   :  { %198 = vmatpush1.msra.mxu0 %v89_v6  ;;  %499 = vmatpush1.msra.mxu1 %v89_v6  ;;  %v58_v33 = vld [vmem:[%s888_s2 + $0x38] sm:$0xff]  ;;  %v57_v35 = vld [vmem:[%s888_s2 + $0x30] sm:$0xff]  ;;  %v32_v36 = vld [vmem:[%s887_s0 + $0x48] sm:$0xff] }
   0xd   :  { %199 = vmatprep.subr.mxu0 %v514_v0  ;;  %481 = vmatprep.subr.mxu1 %v514_v0  ;;  %v60_v37 = vld [vmem:[%s888_s2 + $0x48] sm:$0xff]  ;;  %v31_v38 = vld [vmem:[%s887_s0 + $0x40] sm:$0xff]  ;;  %v34_v40 = vld [vmem:[%s887_s0 + $0x58] sm:$0xff] }
   0xe   :  { %200 = vmatpush1.msra.mxu0 %v88_v7  ;;  %500 = vmatpush1.msra.mxu1 %v88_v7  ;;  %v59_v39 = vld [vmem:[%s888_s2 + $0x40] sm:$0xff]  ;;  %v62_v41 = vld [vmem:[%s888_s2 + $0x58] sm:$0xff]  ;;  %v33_v42 = vld [vmem:[%s887_s0 + $0x50] sm:$0xff] }
   0xf   :  { %201 = vmatprep.subr.mxu0 %v514_v0  ;;  %482 = vmatprep.subr.mxu1 %v514_v0  ;;  %v61_v43 = vld [vmem:[%s888_s2 + $0x50] sm:$0xff]  ;;  %v36_v44 = vld [vmem:[%s887_s0 + $0x68] sm:$0xff]  ;;  %v35_v46 = vld [vmem:[%s887_s0 + $0x60] sm:$0xff] }
  0x10   :  { %202 = vmatpush1.msra.mxu0 %v87_v8  ;;  %501 = vmatpush1.msra.mxu1 %v87_v8  ;;  %v64_v45 = vld [vmem:[%s888_s2 + $0x68] sm:$0xff]  ;;  %v63_v47 = vld [vmem:[%s888_s2 + $0x60] sm:$0xff]  ;;  %v40_v52 = vld [vmem:[%s889_s1 + $0x18] sm:$0xff] }
  0x11   :  { %203 = vmatprep.subr.mxu0 %v514_v0  ;;  %483 = vmatprep.subr.mxu1 %v514_v0  ;;  %v38_v48 = vld [vmem:[%s889_s1 + $0x8] sm:$0xff]  ;;  %v37_v50 = vld [vmem:[%s889_s1] sm:$0xff]  ;;  %v68_v53 = vld [vmem:[%s890_s3 + $0x18] sm:$0xff] }
  0x12   :  { %204 = vmatpush1.msra.mxu0 %v86_v9  ;;  %502 = vmatpush1.msra.mxu1 %v86_v9  ;;  %v66_v49 = vld [vmem:[%s890_s3 + $0x8] sm:$0xff]  ;;  %v65_v51 = vld [vmem:[%s890_s3] sm:$0xff]  ;;  %v39_v54 = vld [vmem:[%s889_s1 + $0x10] sm:$0xff] }
  0x13   :  { %205 = vmatprep.subr.mxu0 %v514_v0  ;;  %484 = vmatprep.subr.mxu1 %v514_v0  ;;  %v67_v55 = vld [vmem:[%s890_s3 + $0x10] sm:$0xff]  ;;  %v42_v56 = vld [vmem:[%s889_s1 + $0x28] sm:$0xff]  ;;  %v41_v58 = vld [vmem:[%s889_s1 + $0x20] sm:$0xff] }
  0x14   :  { %206 = vmatpush1.msra.mxu0 %v85_v10  ;;  %503 = vmatpush1.msra.mxu1 %v85_v10  ;;  %v70_v57 = vld [vmem:[%s890_s3 + $0x28] sm:$0xff]  ;;  %v69_v59 = vld [vmem:[%s890_s3 + $0x20] sm:$0xff]  ;;  %v44_v60 = vld [vmem:[%s889_s1 + $0x38] sm:$0xff] }
  0x15   :  { %207 = vmatprep.subr.mxu0 %v514_v0  ;;  %485 = vmatprep.subr.mxu1 %v514_v0  ;;  %v72_v61 = vld [vmem:[%s890_s3 + $0x38] sm:$0xff]  ;;  %v43_v62 = vld [vmem:[%s889_s1 + $0x30] sm:$0xff]  ;;  %v74_v1 = vld [vmem:[%s890_s3 + $0x48] sm:$0xff] }
  0x16   :  { %208 = vmatpush1.msra.mxu0 %v84_v11  ;;  %504 = vmatpush1.msra.mxu1 %v84_v11  ;;  %v71_v63 = vld [vmem:[%s890_s3 + $0x30] sm:$0xff]  ;;  %v45_v2 = vld [vmem:[%s889_s1 + $0x40] sm:$0xff]  ;;  %v48_v4 = vld [vmem:[%s889_s1 + $0x58] sm:$0xff] }
  0x17   :  { %209 = vmatprep.subr.mxu0 %v514_v0  ;;  %486 = vmatprep.subr.mxu1 %v514_v0  ;;  %v73_v3 = vld [vmem:[%s890_s3 + $0x40] sm:$0xff]  ;;  %v76_v5 = vld [vmem:[%s890_s3 + $0x58] sm:$0xff]  ;;  %v47_v6 = vld [vmem:[%s889_s1 + $0x50] sm:$0xff] }
  0x18   :  { %210 = vmatpush1.msra.mxu0 %v83_v12  ;;  %505 = vmatpush1.msra.mxu1 %v83_v12  ;;  %v75_v7 = vld [vmem:[%s890_s3 + $0x50] sm:$0xff]  ;;  %v50_v8 = vld [vmem:[%s889_s1 + $0x68] sm:$0xff]  ;;  %v49_v10 = vld [vmem:[%s889_s1 + $0x60] sm:$0xff] }
  0x19   :  { %211 = vmatprep.subr.mxu0 %v514_v0  ;;  %487 = vmatprep.subr.mxu1 %v514_v0  ;;  %v78_v9 = vld [vmem:[%s890_s3 + $0x68] sm:$0xff]  ;;  %v77_v11 = vld [vmem:[%s890_s3 + $0x60] sm:$0xff] }
  0x1a   :  { %212 = vmatpush1.msra.mxu0 %v82_v13  ;;  %506 = vmatpush1.msra.mxu1 %v82_v13 }
  0x1b   :  { %213 = vmatprep.subr.mxu0 %v514_v0  ;;  %488 = vmatprep.subr.mxu1 %v514_v0 }
  0x1c   :  { %214 = vmatpush1.msra.mxu0 %v81_v14  ;;  %507 = vmatpush1.msra.mxu1 %v81_v14 }
  0x1d   :  { %215 = vmatprep.subr.mxu0 %v514_v0  ;;  %489 = vmatprep.subr.mxu1 %v514_v0 }
  0x1e   :  { %216 = vmatpush1.msra.mxu0 %v80_v15  ;;  %508 = vmatpush1.msra.mxu1 %v80_v15 }
  0x1f   :  { %217 = vmatprep.subr.mxu0 %v514_v0  ;;  %490 = vmatprep.subr.mxu1 %v514_v0 }
  0x20   :  { %218 = vmatpush1.msra.mxu0 %v79_v16  ;;  %509 = vmatpush1.msra.mxu1 %v79_v16 }
  0x21   :  { %245 = vmatprep.subr.mxu0 %v514_v0  ;;  %491 = vmatprep.subr.mxu1 %v514_v0 }
  0x22   :  { %445 = vmatpush2.msk.msra.mxu0 %vm183_vm0, %v97_v17  ;;  %510 = vmatpush2.msk.msra.mxu1 %vm183_vm0, %v97_v17 }
  0x23   :  { %247 = vmatprep.subr.mxu0 %v514_v0  ;;  %492 = vmatprep.subr.mxu1 %v514_v0 }
  0x24   :  { %248 = vmatpush2.msra.mxu0 %v96_v18  ;;  %511 = vmatpush2.msra.mxu1 %v96_v18 }
  0x25   :  { %249 = vmatprep.subr.mxu0 %v514_v0  ;;  %493 = vmatprep.subr.mxu1 %v514_v0  ;;  %v46_v0 = vld [vmem:[%s889_s1 + $0x48] sm:$0xff] }
  0x26   :  { %250 = vmatpush2.msra.mxu0 %v95_v19  ;;  %512 = vmatpush2.msra.mxu1 %v95_v19 }
  0x27   :  { %446 = vmatprep.mubr.msk.f32.mxu0 %vm98_vm1, %v24_v20  ;;  %460 = vmatprep.mubr.msk.f32.mxu1 %vm98_vm1, %v52_v21 }
  0x28   :  { %252 = vmatmul.mubr.f32.vlgmr.msra.gmra.mxu0 %v23_v22  ;;  %322 = vmatmul.mubr.f32.vlgmr.msra.gmra.mxu1 %v51_v23 }
  0x29   :  { %447 = vmatprep.mubr.msk.f32.mxu0 %vm98_vm1, %v26_v24  ;;  %461 = vmatprep.mubr.msk.f32.mxu1 %vm98_vm1, %v54_v25 }
  0x2c   :  { %257 = vmatmul.mubr.f32.gmra.mxu0 %v25_v26  ;;  %327 = vmatmul.mubr.f32.gmra.mxu1 %v53_v27 }
  0x2d   :  { %448 = vmatprep.mubr.msk.f32.mxu0 %vm98_vm1, %v28_v28  ;;  %462 = vmatprep.mubr.msk.f32.mxu1 %vm98_vm1, %v56_v29 }
  0x30   :  { %262 = vmatmul.mubr.f32.gmra.mxu0 %v27_v30  ;;  %332 = vmatmul.mubr.f32.gmra.mxu1 %v55_v31 }
  0x31   :  { %449 = vmatprep.mubr.msk.f32.mxu0 %vm98_vm1, %v30_v32  ;;  %463 = vmatprep.mubr.msk.f32.mxu1 %vm98_vm1, %v58_v33 }
  0x34   :  { %267 = vmatmul.mubr.f32.gmra.mxu0 %v29_v34  ;;  %337 = vmatmul.mubr.f32.gmra.mxu1 %v57_v35 }
  0x35   :  { %450 = vmatprep.mubr.msk.f32.mxu0 %vm98_vm1, %v32_v36  ;;  %464 = vmatprep.mubr.msk.f32.mxu1 %vm98_vm1, %v60_v37 }
  0x38   :  { %272 = vmatmul.mubr.f32.gmra.mxu0 %v31_v38  ;;  %342 = vmatmul.mubr.f32.gmra.mxu1 %v59_v39 }
  0x39   :  { %451 = vmatprep.mubr.msk.f32.mxu0 %vm98_vm1, %v34_v40  ;;  %465 = vmatprep.mubr.msk.f32.mxu1 %vm98_vm1, %v62_v41 }
  0x3c   :  { %277 = vmatmul.mubr.f32.gmra.mxu0 %v33_v42  ;;  %347 = vmatmul.mubr.f32.gmra.mxu1 %v61_v43 }
  0x3d   :  { %452 = vmatprep.mubr.msk.f32.mxu0 %vm98_vm1, %v36_v44  ;;  %466 = vmatprep.mubr.msk.f32.mxu1 %vm98_vm1, %v64_v45  ;;  %v852_v44 = vld [vmem:[%s891_s5] ss:$0 sm:$0xff] }
  0x40   :  { %282 = vmatmul.mubr.f32.gmra.mxu0 %v35_v46  ;;  %352 = vmatmul.mubr.f32.gmra.mxu1 %v63_v47 }
  0x41   :  { %453 = vmatprep.mubr.msk.f32.mxu0 %vm98_vm1, %v38_v48  ;;  %467 = vmatprep.mubr.msk.f32.mxu1 %vm98_vm1, %v66_v49 }
  0x44   :  { %287 = vmatmul.mubr.f32.gmra.mxu0 %v37_v50  ;;  %357 = vmatmul.mubr.f32.gmra.mxu1 %v65_v51 }
  0x45   :  { %454 = vmatprep.mubr.msk.f32.mxu0 %vm98_vm1, %v40_v52  ;;  %468 = vmatprep.mubr.msk.f32.mxu1 %vm98_vm1, %v68_v53 }
  0x48   :  { %292 = vmatmul.mubr.f32.gmra.mxu0 %v39_v54  ;;  %362 = vmatmul.mubr.f32.gmra.mxu1 %v67_v55 }
  0x49   :  { %455 = vmatprep.mubr.msk.f32.mxu0 %vm98_vm1, %v42_v56  ;;  %469 = vmatprep.mubr.msk.f32.mxu1 %vm98_vm1, %v70_v57 }
  0x4c   :  { %297 = vmatmul.mubr.f32.gmra.mxu0 %v41_v58  ;;  %367 = vmatmul.mubr.f32.gmra.mxu1 %v69_v59 }
  0x4d   :  { %456 = vmatprep.mubr.msk.f32.mxu0 %vm98_vm1, %v44_v60  ;;  %470 = vmatprep.mubr.msk.f32.mxu1 %vm98_vm1, %v72_v61 }
  0x50   :  { %302 = vmatmul.mubr.f32.gmra.mxu0 %v43_v62  ;;  %372 = vmatmul.mubr.f32.gmra.mxu1 %v71_v63 }
  0x51   :  { %457 = vmatprep.mubr.msk.f32.mxu0 %vm98_vm1, %v46_v0  ;;  %471 = vmatprep.mubr.msk.f32.mxu1 %vm98_vm1, %v74_v1 }
  0x54   :  { %307 = vmatmul.mubr.f32.gmra.mxu0 %v45_v2  ;;  %377 = vmatmul.mubr.f32.gmra.mxu1 %v73_v3 }
  0x55   :  { %458 = vmatprep.mubr.msk.f32.mxu0 %vm98_vm1, %v48_v4  ;;  %472 = vmatprep.mubr.msk.f32.mxu1 %vm98_vm1, %v76_v5 }
  0x58   :  { %312 = vmatmul.mubr.f32.gmra.mxu0 %v47_v6  ;;  %382 = vmatmul.mubr.f32.gmra.mxu1 %v75_v7 }
  0x59   :  { %459 = vmatprep.mubr.msk.f32.mxu0 %vm98_vm1, %v50_v8  ;;  %473 = vmatprep.mubr.msk.f32.mxu1 %vm98_vm1, %v78_v9 }
  0x5c   :  { %317 = vmatmul.mubr.f32.gmra.mxu0 %v49_v10  ;;  %387 = vmatmul.mubr.f32.gmra.mxu1 %v77_v11 }
  0xe8   :  { %v253_v12 = vpop.f32.mrf.mxu0  ;;  %v323_v13 = vpop.f32.mrf.mxu1 }
  0xea   :  { %v255_v14 = vpop.f32.mrf.mxu0  ;;  %v325_v15 = vpop.f32.mrf.mxu1 }
  0xec   :  { %v258_v16 = vpop.f32.mrf.mxu0  ;;  %v328_v17 = vpop.f32.mrf.mxu1 }
  0xee   :  { %v260_v18 = vpop.f32.mrf.mxu0  ;;  %v330_v19 = vpop.f32.mrf.mxu1 }
  0xf0   :  { %v263_v20 = vpop.f32.mrf.mxu0  ;;  %v333_v21 = vpop.f32.mrf.mxu1 }
  0xf2   :  { %v265_v22 = vpop.f32.mrf.mxu0  ;;  %v335_v23 = vpop.f32.mrf.mxu1 }
  0xf4   :  { %v268_v24 = vpop.f32.mrf.mxu0  ;;  %v338_v25 = vpop.f32.mrf.mxu1 }
  0xf6   :  { %v270_v26 = vpop.f32.mrf.mxu0  ;;  %v340_v27 = vpop.f32.mrf.mxu1 }
  0xf8   :  { %v273_v28 = vpop.f32.mrf.mxu0  ;;  %v343_v29 = vpop.f32.mrf.mxu1 }
  0xfa   :  { %v275_v30 = vpop.f32.mrf.mxu0  ;;  %v345_v31 = vpop.f32.mrf.mxu1 }
  0xfc   :  { %v841_v32 = vpop.f32.mrf.mxu0  ;;  %v843_v33 = vpop.f32.mrf.mxu1 }
  0xfe   :  { %v280_v34 = vpop.f32.mrf.mxu0  ;;  %v350_v35 = vpop.f32.mrf.mxu1 }
 0x100   :  { %v845_v36 = vpop.f32.mrf.mxu0  ;;  %v847_v37 = vpop.f32.mrf.mxu1 }
 0x102   :  { %v285_v38 = vpop.f32.mrf.mxu0  ;;  %v355_v39 = vpop.f32.mrf.mxu1 }
 0x104   :  { %v288_v40 = vpop.f32.mrf.mxu0  ;;  %v358_v41 = vpop.f32.mrf.mxu1 }
 0x105   :  { %v392_v42 = vmax.f32 %v253_v12, %v288_v40  ;;  %v399_v43 = vmax.f32 %v323_v13, %v358_v41 }
 0x106   :  { %v290_v45 = vpop.f32.mrf.mxu0  ;;  %v360_v46 = vpop.f32.mrf.mxu1 }
 0x107   :  { %v406_v47 = vmax.f32 %v392_v42, %v399_v43 }
 0x108   :  { %v293_v48 = vpop.f32.mrf.mxu0  ;;  %v363_v49 = vpop.f32.mrf.mxu1 }
 0x109   :  { %v420_v50 = vadd.f32 %v852_v44, %v406_v47  ;;  %v393_v51 = vmax.f32 %v258_v16, %v293_v48  ;;  %v400_v52 = vmax.f32 %v328_v17, %v363_v49 }
 0x10a   :  { %v295_v53 = vpop.f32.mrf.mxu0  ;;  %v365_v54 = vpop.f32.mrf.mxu1 }
 0x10b   :  { %v427_v55 = vmax.f32 %v420_v50, 0.0  ;;  %v407_v56 = vmax.f32 %v393_v51, %v400_v52 }
 0x10c   :  { %v298_v57 = vpop.f32.mrf.mxu0  ;;  %v368_v58 = vpop.f32.mrf.mxu1 }
 0x10d   :  { %434 = vst [vmem:[%s892_s6] sm:$0xff] %v427_v55  ;;  %v421_v59 = vadd.f32 %v852_v44, %v407_v56  ;;  %v394_v60 = vmax.f32 %v263_v20, %v298_v57  ;;  %v401_v61 = vmax.f32 %v333_v21, %v368_v58 }
 0x10e   :  { %v300_v62 = vpop.f32.mrf.mxu0  ;;  %v370_v63 = vpop.f32.mrf.mxu1 }
 0x10f   :  { %v428_v0 = vmax.f32 %v421_v59, 0.0  ;;  %v408_v1 = vmax.f32 %v394_v60, %v401_v61 }
 0x110   :  { %v303_v2 = vpop.f32.mrf.mxu0  ;;  %v373_v3 = vpop.f32.mrf.mxu1 }
 0x111   :  { %435 = vst [vmem:[%s892_s6 + $0x8] sm:$0xff] %v428_v0  ;;  %v422_v4 = vadd.f32 %v852_v44, %v408_v1  ;;  %v395_v5 = vmax.f32 %v268_v24, %v303_v2  ;;  %v402_v6 = vmax.f32 %v338_v25, %v373_v3 }
 0x112   :  { %v305_v7 = vpop.f32.mrf.mxu0  ;;  %v375_v8 = vpop.f32.mrf.mxu1 }
 0x113   :  { %v429_v9 = vmax.f32 %v422_v4, 0.0  ;;  %v409_v10 = vmax.f32 %v395_v5, %v402_v6 }
 0x114   :  { %v308_v11 = vpop.f32.mrf.mxu0  ;;  %v378_v12 = vpop.f32.mrf.mxu1 }
 0x115   :  { %436 = vst [vmem:[%s892_s6 + $0x10] sm:$0xff] %v429_v9  ;;  %v423_v13 = vadd.f32 %v852_v44, %v409_v10  ;;  %v396_v14 = vmax.f32 %v273_v28, %v308_v11  ;;  %v403_v15 = vmax.f32 %v343_v29, %v378_v12 }
 0x116   :  { %v310_v16 = vpop.f32.mrf.mxu0  ;;  %v380_v17 = vpop.f32.mrf.mxu1 }
 0x117   :  { %v430_v18 = vmax.f32 %v423_v13, 0.0  ;;  %v410_v19 = vmax.f32 %v396_v14, %v403_v15 }
 0x118   :  { %v313_v20 = vpop.f32.mrf.mxu0  ;;  %v383_v21 = vpop.f32.mrf.mxu1 }
 0x119   :  { %437 = vst [vmem:[%s892_s6 + $0x18] sm:$0xff] %v430_v18  ;;  %v424_v22 = vadd.f32 %v852_v44, %v410_v19  ;;  %v397_v23 = vmax.f32 %v841_v32, %v313_v20  ;;  %v404_v24 = vmax.f32 %v843_v33, %v383_v21 }
 0x11a   :  { %v315_v25 = vpop.f32.mrf.mxu0  ;;  %v385_v26 = vpop.f32.mrf.mxu1 }
 0x11b   :  { %v431_v27 = vmax.f32 %v424_v22, 0.0  ;;  %v411_v28 = vmax.f32 %v397_v23, %v404_v24 }
 0x11c   :  { %v318_v29 = vpop.f32.mrf.mxu0  ;;  %v388_v30 = vpop.f32.mrf.mxu1 }
 0x11d   :  { %438 = vst [vmem:[%s892_s6 + $0x20] sm:$0xff] %v431_v27  ;;  %v425_v31 = vadd.f32 %v852_v44, %v411_v28  ;;  %v398_v34 = vmax.f32 %v845_v36, %v318_v29  ;;  %v405_v35 = vmax.f32 %v847_v37, %v388_v30 }
 0x11e   :  { %v320_v38 = vpop.f32.mrf.mxu0  ;;  %v390_v32 = vpop.f32.mrf.mxu1 }
 0x11f   :  { %v432_v39 = vmax.f32 %v425_v31, 0.0  ;;  %v412_v33 = vmax.f32 %v398_v34, %v405_v35 }
 0x121   :  { %439 = vst [vmem:[%s892_s6 + $0x28] sm:$0xff] %v432_v39  ;;  %v426_v40 = vadd.f32 %v852_v44, %v412_v33 }
 0x123   :  { %v433_v41 = vmax.f32 %v426_v40, 0.0 }
 0x125   :  { %440 = vst [vmem:[%s892_s6 + $0x30] sm:$0xff] %v433_v41 }

// kernel: tutorial_cnn_forward.5
= control target key start
LH: loop header
LB: loop body
LE: loop exit
PB: predicated region body
PF: predicated region fallthrough
CT: control target
= control target key end

     0   :  { %v569_v1 = vmov 0.0   ;;  %vm87_vm0 = vcmask 130048   ;;  %vm570_vm1 = vmmov 0   ;;  %s933_s1 = inlined_call_operand.vmem [shape: f32[400,128], index: 1, kind: input, shape index: {}]   ;;  %s934_s0 = inlined_call_operand.vmem [shape: f32[8,400], index: 0, kind: input, shape index: {}]   ;;  %s935_s3 = inlined_call_operand.vmem [shape: f32[128,128], index: 3, kind: input, shape index: {}]   ;;  %s936_s5 = inlined_call_operand.vmem [shape: f32[128,128], index: 5, kind: input, shape index: {}]   ;;  %s937_s2 = inlined_call_operand.vmem [shape: f32[1,128], index: 2, kind: input, shape index: {}]   ;;  %s938_s4 = inlined_call_operand.vmem [shape: f32[1,128], index: 4, kind: input, shape index: {}]   ;;  %s939_s6 = inlined_call_operand.vmem [shape: f32[1,128], index: 6, kind: input, shape index: {}]   ;;  %s940_s7 = inlined_call_operand.vmem [shape: f32[8,128], index: 7, kind: output, shape index: {}]  }
   0x1   :  { %v61_v0 = vld [vmem:[%s933_s1 + $0xf8] sm:$0xff]  ;;  %161 = vmatprep.subr.mxu1 %v569_v1  ;;  %v60_v4 = vld [vmem:[%s933_s1 + $0xf0] sm:$0xff]  ;;  %v59_v7 = vld [vmem:[%s933_s1 + $0xe8] sm:$0xff] }
   0x2   :  { %v45_v2 = vld [vmem:[%s933_s1 + $0x78] sm:$0xff]  ;;  %428 = vmatprep.subr.mxu0 %v61_v0  ;;  %v44_v5 = vld [vmem:[%s933_s1 + $0x70] sm:$0xff]  ;;  %v75_v8 = vld [vmem:[%s933_s1 + $0x168] sm:$0xff] }
   0x3   :  { %v77_v3 = vld [vmem:[%s933_s1 + $0x178] sm:$0xff]  ;;  %v76_v6 = vld [vmem:[%s933_s1 + $0x170] sm:$0xff]  ;;  %429 = vmatpush3.msra.mxu0 %v45_v2  ;;  %v43_v9 = vld [vmem:[%s933_s1 + $0x68] sm:$0xff] }
   0x4   :  { %162 = vmatpush1.msra.mxu1 %v77_v3  ;;  %430 = vmatprep.subr.mxu0 %v60_v4  ;;  %v58_v10 = vld [vmem:[%s933_s1 + $0xe0] sm:$0xff]  ;;  %v57_v13 = vld [vmem:[%s933_s1 + $0xd8] sm:$0xff]  ;;  %v56_v16 = vld [vmem:[%s933_s1 + $0xd0] sm:$0xff] }
   0x5   :  { %163 = vmatprep.subr.mxu1 %v569_v1  ;;  %431 = vmatpush3.msra.mxu0 %v44_v5  ;;  %v74_v11 = vld [vmem:[%s933_s1 + $0x160] sm:$0xff]  ;;  %v73_v14 = vld [vmem:[%s933_s1 + $0x158] sm:$0xff]  ;;  %v72_v17 = vld [vmem:[%s933_s1 + $0x150] sm:$0xff] }
   0x6   :  { %164 = vmatpush1.msra.mxu1 %v76_v6  ;;  %432 = vmatprep.subr.mxu0 %v59_v7  ;;  %v42_v12 = vld [vmem:[%s933_s1 + $0x60] sm:$0xff]  ;;  %v41_v15 = vld [vmem:[%s933_s1 + $0x58] sm:$0xff]  ;;  %v40_v18 = vld [vmem:[%s933_s1 + $0x50] sm:$0xff] }
   0x7   :  { %165 = vmatprep.subr.mxu1 %v569_v1  ;;  %433 = vmatpush3.msra.mxu0 %v43_v9  ;;  %v55_v19 = vld [vmem:[%s933_s1 + $0xc8] sm:$0xff]  ;;  %v54_v22 = vld [vmem:[%s933_s1 + $0xc0] sm:$0xff]  ;;  %v53_v25 = vld [vmem:[%s933_s1 + $0xb8] sm:$0xff] }
   0x8   :  { %166 = vmatpush1.msra.mxu1 %v75_v8  ;;  %434 = vmatprep.subr.mxu0 %v58_v10  ;;  %v71_v20 = vld [vmem:[%s933_s1 + $0x148] sm:$0xff]  ;;  %v70_v23 = vld [vmem:[%s933_s1 + $0x140] sm:$0xff]  ;;  %v69_v26 = vld [vmem:[%s933_s1 + $0x138] sm:$0xff] }
   0x9   :  { %167 = vmatprep.subr.mxu1 %v569_v1  ;;  %435 = vmatpush3.msra.mxu0 %v42_v12  ;;  %v39_v21 = vld [vmem:[%s933_s1 + $0x48] sm:$0xff]  ;;  %v38_v24 = vld [vmem:[%s933_s1 + $0x40] sm:$0xff]  ;;  %v37_v27 = vld [vmem:[%s933_s1 + $0x38] sm:$0xff] }
   0xa   :  { %168 = vmatpush1.msra.mxu1 %v74_v11  ;;  %436 = vmatprep.subr.mxu0 %v57_v13  ;;  %v52_v28 = vld [vmem:[%s933_s1 + $0xb0] sm:$0xff]  ;;  %v51_v31 = vld [vmem:[%s933_s1 + $0xa8] sm:$0xff]  ;;  %v50_v34 = vld [vmem:[%s933_s1 + $0xa0] sm:$0xff] }
   0xb   :  { %169 = vmatprep.subr.mxu1 %v569_v1  ;;  %437 = vmatpush3.msra.mxu0 %v41_v15  ;;  %v68_v29 = vld [vmem:[%s933_s1 + $0x130] sm:$0xff]  ;;  %v67_v32 = vld [vmem:[%s933_s1 + $0x128] sm:$0xff]  ;;  %v66_v35 = vld [vmem:[%s933_s1 + $0x120] sm:$0xff] }
   0xc   :  { %170 = vmatpush1.msra.mxu1 %v73_v14  ;;  %438 = vmatprep.subr.mxu0 %v56_v16  ;;  %v36_v30 = vld [vmem:[%s933_s1 + $0x30] sm:$0xff]  ;;  %v35_v33 = vld [vmem:[%s933_s1 + $0x28] sm:$0xff]  ;;  %v34_v36 = vld [vmem:[%s933_s1 + $0x20] sm:$0xff] }
   0xd   :  { %171 = vmatprep.subr.mxu1 %v569_v1  ;;  %439 = vmatpush3.msra.mxu0 %v40_v18  ;;  %v49_v37 = vld [vmem:[%s933_s1 + $0x98] sm:$0xff]  ;;  %v48_v40 = vld [vmem:[%s933_s1 + $0x90] sm:$0xff]  ;;  %v47_v43 = vld [vmem:[%s933_s1 + $0x88] sm:$0xff] }
   0xe   :  { %172 = vmatpush1.msra.mxu1 %v72_v17  ;;  %440 = vmatprep.subr.mxu0 %v55_v19  ;;  %v65_v38 = vld [vmem:[%s933_s1 + $0x118] sm:$0xff]  ;;  %v64_v41 = vld [vmem:[%s933_s1 + $0x110] sm:$0xff]  ;;  %v63_v44 = vld [vmem:[%s933_s1 + $0x108] sm:$0xff] }
   0xf   :  { %173 = vmatprep.subr.mxu1 %v569_v1  ;;  %441 = vmatpush3.msra.mxu0 %v39_v21  ;;  %v33_v39 = vld [vmem:[%s933_s1 + $0x18] sm:$0xff]  ;;  %v32_v42 = vld [vmem:[%s933_s1 + $0x10] sm:$0xff]  ;;  %v31_v45 = vld [vmem:[%s933_s1 + $0x8] sm:$0xff] }
  0x10   :  { %174 = vmatpush1.msra.mxu1 %v71_v20  ;;  %442 = vmatprep.subr.mxu0 %v54_v22  ;;  %v46_v46 = vld [vmem:[%s933_s1 + $0x80] sm:$0xff]  ;;  %v27_v47 = vld [vmem:[%s934_s0 + $0x8] sm:$0xff]  ;;  %v29_v52 = vld [vmem:[%s934_s0 + $0x18] sm:$0xff] }
  0x11   :  { %175 = vmatprep.subr.mxu1 %v569_v1  ;;  %443 = vmatpush3.msra.mxu0 %v38_v24  ;;  %v30_v48 = vld [vmem:[%s933_s1] sm:$0xff]  ;;  %v79_v51 = vld [vmem:[%s933_s1 + $0x188] sm:$0xff]  ;;  %v247_v54 = vld [vmem:[%s935_s3 + $0x78] sm:$0xff] }
  0x12   :  { %176 = vmatpush1.msra.mxu1 %v70_v23  ;;  %444 = vmatprep.subr.mxu0 %v53_v25  ;;  %v62_v49 = vld [vmem:[%s933_s1 + $0x100] sm:$0xff]  ;;  %v28_v55 = vld [vmem:[%s934_s0 + $0x10] sm:$0xff]  ;;  %v245_v57 = vld [vmem:[%s935_s3 + $0x68] sm:$0xff] }
  0x13   :  { %177 = vmatprep.subr.mxu1 %v569_v1  ;;  %445 = vmatpush3.msra.mxu0 %v37_v27  ;;  %v26_v50 = vld [vmem:[%s934_s0] sm:$0xff]  ;;  %v246_v56 = vld [vmem:[%s935_s3 + $0x70] sm:$0xff]  ;;  %v243_v59 = vld [vmem:[%s935_s3 + $0x58] sm:$0xff] }
  0x14   :  { %178 = vmatpush1.msra.mxu1 %v69_v26  ;;  %446 = vmatprep.subr.mxu0 %v52_v28  ;;  %v78_v53 = vld [vmem:[%s933_s1 + $0x180] sm:$0xff]  ;;  %v242_v60 = vld [vmem:[%s935_s3 + $0x50] sm:$0xff]  ;;  %v241_v61 = vld [vmem:[%s935_s3 + $0x48] sm:$0xff] }
  0x15   :  { %179 = vmatprep.subr.mxu1 %v569_v1  ;;  %447 = vmatpush3.msra.mxu0 %v36_v30  ;;  %v244_v58 = vld [vmem:[%s935_s3 + $0x60] sm:$0xff]  ;;  %v239_v63 = vld [vmem:[%s935_s3 + $0x38] sm:$0xff]  ;;  %v238_v0 = vld [vmem:[%s935_s3 + $0x30] sm:$0xff] }
  0x16   :  { %180 = vmatpush1.msra.mxu1 %v68_v29  ;;  %448 = vmatprep.subr.mxu0 %v51_v31  ;;  %v240_v62 = vld [vmem:[%s935_s3 + $0x40] sm:$0xff]  ;;  %v237_v2 = vld [vmem:[%s935_s3 + $0x28] sm:$0xff]  ;;  %v235_v4 = vld [vmem:[%s935_s3 + $0x18] sm:$0xff] }
  0x17   :  { %181 = vmatprep.subr.mxu1 %v569_v1  ;;  %449 = vmatpush3.msra.mxu0 %v35_v33  ;;  %v236_v3 = vld [vmem:[%s935_s3 + $0x20] sm:$0xff]  ;;  %v234_v5 = vld [vmem:[%s935_s3 + $0x10] sm:$0xff]  ;;  %v233_v6 = vld [vmem:[%s935_s3 + $0x8] sm:$0xff] }
  0x18   :  { %182 = vmatpush1.msra.mxu1 %v67_v32  ;;  %450 = vmatprep.subr.mxu0 %v50_v34  ;;  %v232_v7 = vld [vmem:[%s935_s3] sm:$0xff]  ;;  %v341_v8 = vld [vmem:[%s936_s5 + $0x78] sm:$0xff]  ;;  %v340_v9 = vld [vmem:[%s936_s5 + $0x70] sm:$0xff] }
  0x19   :  { %183 = vmatprep.subr.mxu1 %v569_v1  ;;  %451 = vmatpush3.msra.mxu0 %v34_v36  ;;  %v339_v10 = vld [vmem:[%s936_s5 + $0x68] sm:$0xff]  ;;  %v338_v11 = vld [vmem:[%s936_s5 + $0x60] sm:$0xff]  ;;  %v337_v12 = vld [vmem:[%s936_s5 + $0x58] sm:$0xff] }
  0x1a   :  { %184 = vmatpush1.msra.mxu1 %v66_v35  ;;  %452 = vmatprep.subr.mxu0 %v49_v37  ;;  %v336_v13 = vld [vmem:[%s936_s5 + $0x50] sm:$0xff]  ;;  %v335_v14 = vld [vmem:[%s936_s5 + $0x48] sm:$0xff]  ;;  %v334_v15 = vld [vmem:[%s936_s5 + $0x40] sm:$0xff] }
  0x1b   :  { %185 = vmatprep.subr.mxu1 %v569_v1  ;;  %453 = vmatpush3.msra.mxu0 %v33_v39  ;;  %v333_v16 = vld [vmem:[%s936_s5 + $0x38] sm:$0xff]  ;;  %v332_v17 = vld [vmem:[%s936_s5 + $0x30] sm:$0xff]  ;;  %v331_v18 = vld [vmem:[%s936_s5 + $0x28] sm:$0xff] }
  0x1c   :  { %186 = vmatpush1.msra.mxu1 %v65_v38  ;;  %454 = vmatprep.subr.mxu0 %v48_v40  ;;  %v330_v19 = vld [vmem:[%s936_s5 + $0x20] sm:$0xff]  ;;  %v329_v20 = vld [vmem:[%s936_s5 + $0x18] sm:$0xff]  ;;  %v328_v30 = vld [vmem:[%s936_s5 + $0x10] sm:$0xff] }
  0x1d   :  { %187 = vmatprep.subr.mxu1 %v569_v1  ;;  %455 = vmatpush3.msra.mxu0 %v32_v42  ;;  %v424_v23 = vld [vmem:[%s937_s2] ss:$0 sm:$0xff]  ;;  %v327_v31 = vld [vmem:[%s936_s5 + $0x8] sm:$0xff] }
  0x1e   :  { %188 = vmatpush1.msra.mxu1 %v64_v41  ;;  %456 = vmatprep.subr.mxu0 %v47_v43  ;;  %v326_v32 = vld [vmem:[%s936_s5] sm:$0xff] }
  0x1f   :  { %189 = vmatprep.subr.mxu1 %v569_v1  ;;  %457 = vmatpush3.msra.mxu0 %v31_v45  ;;  %v426_v33 = vld [vmem:[%s938_s4] ss:$0 sm:$0xff] }
  0x20   :  { %190 = vmatpush1.msra.mxu1 %v63_v44  ;;  %458 = vmatprep.subr.mxu0 %v46_v46  ;;  %v427_v38 = vld [vmem:[%s939_s6] ss:$0 sm:$0xff] }
  0x21   :  { %191 = vmatprep.subr.mxu1 %v569_v1  ;;  %155 = vmatprep.mubr.f32.mxu0 %v27_v47 }
  0x22   :  { %459 = vmatpush3.msra.mxu0 %v30_v48  ;;  %192 = vmatpush1.msra.mxu1 %v62_v49 }
  0x23   :  { %156 = vmatmul.mubr.f32.vlgmr.msra.gmra.mxu0 %v26_v50  ;;  %221 = vmatprep.subr.mxu1 %v569_v1 }
  0x24   :  { %222 = vmatpush2.msra.mxu1 %v79_v51  ;;  %425 = vmatprep.mubr.msk.f32.mxu1 %vm87_vm0, %v29_v52 }
  0x25   :  { %223 = vmatprep.subr.mxu1 %v569_v1  ;;  %497 = vmatprep.subr.mxu0 %v569_v1 }
  0x26   :  { %224 = vmatpush2.msra.mxu1 %v78_v53  ;;  %498 = vmatpush3.msra.mxu0 %v247_v54 }
  0x27   :  { %226 = vmatmul.mubr.f32.vlgmr.msra.gmra.mxu1 %v28_v55  ;;  %499 = vmatprep.subr.mxu0 %v569_v1 }
  0x28   :  { %500 = vmatpush3.msra.mxu0 %v246_v56  ;;  %532 = vmatprep.subr.mxu1 %v569_v1 }
  0x29   :  { %501 = vmatprep.subr.mxu0 %v569_v1  ;;  %529 = vmatprep.mubr.msk.f32.mxu0 %vm570_vm1, %v569_v1 }
  0x2a   :  { %502 = vmatpush3.msra.mxu0 %v245_v57  ;;  %564 = vmatprep.mubr.msk.f32.mxu1 %vm570_vm1, %v569_v1 }
  0x2b   :  { %503 = vmatprep.subr.mxu0 %v569_v1  ;;  %533 = vmatpush3.msra.mxu1 %v341_v8 }
  0x2c   :  { %504 = vmatpush3.msra.mxu0 %v244_v58  ;;  %534 = vmatprep.subr.mxu1 %v569_v1 }
  0x2d   :  { %505 = vmatprep.subr.mxu0 %v569_v1  ;;  %535 = vmatpush3.msra.mxu1 %v340_v9 }
  0x2e   :  { %506 = vmatpush3.msra.mxu0 %v243_v59  ;;  %536 = vmatprep.subr.mxu1 %v569_v1 }
  0x2f   :  { %507 = vmatprep.subr.mxu0 %v569_v1  ;;  %537 = vmatpush3.msra.mxu1 %v339_v10 }
  0x30   :  { %508 = vmatpush3.msra.mxu0 %v242_v60  ;;  %538 = vmatprep.subr.mxu1 %v569_v1 }
  0x31   :  { %509 = vmatprep.subr.mxu0 %v569_v1  ;;  %539 = vmatpush3.msra.mxu1 %v338_v11 }
  0x32   :  { %510 = vmatpush3.msra.mxu0 %v241_v61  ;;  %540 = vmatprep.subr.mxu1 %v569_v1 }
  0x33   :  { %511 = vmatprep.subr.mxu0 %v569_v1  ;;  %541 = vmatpush3.msra.mxu1 %v337_v12 }
  0x34   :  { %512 = vmatpush3.msra.mxu0 %v240_v62  ;;  %542 = vmatprep.subr.mxu1 %v569_v1 }
  0x35   :  { %513 = vmatprep.subr.mxu0 %v569_v1  ;;  %543 = vmatpush3.msra.mxu1 %v336_v13 }
  0x36   :  { %514 = vmatpush3.msra.mxu0 %v239_v63  ;;  %544 = vmatprep.subr.mxu1 %v569_v1 }
  0x37   :  { %515 = vmatprep.subr.mxu0 %v569_v1  ;;  %545 = vmatpush3.msra.mxu1 %v335_v14 }
  0x38   :  { %516 = vmatpush3.msra.mxu0 %v238_v0  ;;  %546 = vmatprep.subr.mxu1 %v569_v1 }
  0x39   :  { %517 = vmatprep.subr.mxu0 %v569_v1  ;;  %547 = vmatpush3.msra.mxu1 %v334_v15 }
  0x3a   :  { %518 = vmatpush3.msra.mxu0 %v237_v2  ;;  %548 = vmatprep.subr.mxu1 %v569_v1 }
  0x3b   :  { %519 = vmatprep.subr.mxu0 %v569_v1  ;;  %549 = vmatpush3.msra.mxu1 %v333_v16 }
  0x3c   :  { %520 = vmatpush3.msra.mxu0 %v236_v3  ;;  %550 = vmatprep.subr.mxu1 %v569_v1 }
  0x3d   :  { %521 = vmatprep.subr.mxu0 %v569_v1  ;;  %551 = vmatpush3.msra.mxu1 %v332_v17 }
  0x3e   :  { %522 = vmatpush3.msra.mxu0 %v235_v4  ;;  %552 = vmatprep.subr.mxu1 %v569_v1 }
  0x3f   :  { %523 = vmatprep.subr.mxu0 %v569_v1  ;;  %553 = vmatpush3.msra.mxu1 %v331_v18 }
  0x40   :  { %524 = vmatpush3.msra.mxu0 %v234_v5  ;;  %554 = vmatprep.subr.mxu1 %v569_v1 }
  0x41   :  { %525 = vmatprep.subr.mxu0 %v569_v1  ;;  %555 = vmatpush3.msra.mxu1 %v330_v19 }
  0x42   :  { %526 = vmatpush3.msra.mxu0 %v233_v6  ;;  %556 = vmatprep.subr.mxu1 %v569_v1 }
  0x43   :  { %527 = vmatprep.subr.mxu0 %v569_v1  ;;  %557 = vmatpush3.msra.mxu1 %v329_v20 }
  0x44   :  { %528 = vmatpush3.msra.mxu0 %v232_v7  ;;  %558 = vmatprep.subr.mxu1 %v569_v1 }
  0x45   :  { %559 = vmatpush3.msra.mxu1 %v328_v30 }
  0x46   :  { %560 = vmatprep.subr.mxu1 %v569_v1 }
  0x47   :  { %561 = vmatpush3.msra.mxu1 %v327_v31 }
  0x48   :  { %562 = vmatprep.subr.mxu1 %v569_v1 }
  0x49   :  { %563 = vmatpush3.msra.mxu1 %v326_v32 }
  0xe3   :  { %v460_v21 = vpop.f32.mrf.mxu0 }
  0xe5   :  { %v461_v22 = vpop.f32.mrf.mxu0 }
  0xe6   :  { %v462_v24 = vadd.f32 %v461_v22, %v460_v21 }
  0xe7   :  { %v227_v25 = vpop.f32.mrf.mxu1 }
  0xe8   :  { %v158_v26 = vadd.f32 %v462_v24, %v424_v23 }
  0xe9   :  { %v229_v27 = vpop.f32.mrf.mxu1 }
  0xea   :  { %v228_v28 = vadd.f32 %v227_v25, %v158_v26 }
  0xec   :  { %v231_v29 = vmax.f32 %v228_v28, 0.0 }
  0xee   :  { %530 = vmatmul.mubr.f32.vlgmr.msra.gmra.mxu0 %v231_v29 }
 0x1ae   :  { %v321_v34 = vpop.f32.mrf.mxu0 }
 0x1af   :  { %v322_v35 = vadd.f32 %v426_v33, %v321_v34 }
 0x1b0   :  { %v531_v36 = vpop.f32.mrf.mxu0 }
 0x1b1   :  { %v325_v37 = vmax.f32 %v322_v35, 0.0 }
 0x1b3   :  { %565 = vmatmul.mubr.f32.vlgmr.msra.gmra.mxu1 %v325_v37 }
 0x273   :  { %v415_v39 = vpop.f32.mrf.mxu1 }
 0x274   :  { %v416_v1 = vadd.f32 %v427_v38, %v415_v39 }
 0x275   :  { %v566_v40 = vpop.f32.mrf.mxu1 }
 0x276   :  { %419 = vst [vmem:[%s940_s7] sm:$0xff] %v416_v1 }

</bundles_post_ra>
